<compile_context>
chip_gen: v7x
topology: tpu7x:2x2x1
jax: 0.10.0
libtpu: 0.0.40
codegen_flags: <defaults>
</compile_context>

<pallas_src>
import functools

import jax
import jax.numpy as jnp
from jax.experimental import pallas as pl
from jax.experimental.pallas import tpu as pltpu


_VMEM_SPEC = pl.BlockSpec(memory_space=pltpu.MemorySpace.VMEM)


# ----------------------------- Pallas kernel -------------------------------

def _cheb_slab(two_l, x, K, cd):
    """Chebyshev slab [T_0 | T_1 | ... | T_{K-1}] stacked along features.

    two_l is the pre-doubled scaled Laplacian (2 * L_hat) in dtype `cd`.
    T_k carries stay in float32; only the L@T operands are cast to `cd`.
    """
    terms = [x]
    if K > 1:
        t_prev = x
        t_cur = 0.5 * jnp.dot(two_l, x.astype(cd),
                              preferred_element_type=jnp.float32)
        terms.append(t_cur)
        for _ in range(2, K):
            t_next = jnp.dot(two_l, t_cur.astype(cd),
                             preferred_element_type=jnp.float32) - t_prev
            terms.append(t_next)
            t_prev, t_cur = t_cur, t_next
    return jnp.concatenate(terms, axis=1)


def _fused_graph_resnet_kernel(two_l_ref, x0_ref, wblk_ref, bblk_ref,
                               wmix_ref, bmix_ref, o_ref,
                               *, depth, K, K_mix, Fp, compute_dtype):
    """Entire Graph_resnet forward in one kernel; everything stays in VMEM."""
    two_l = two_l_ref[...]                      # [Np, Np], compute_dtype
    x0 = x0_ref[...]                            # [Np, Fp], f32
    x = x0
    for d in range(depth):                      # static unroll (depth is small)
        slab = _cheb_slab(two_l, x, K, compute_dtype)            # [Np, K*Fp]
        # One lane-dense combine matmul: cols [0:Fp] = main ChebConv_K,
        # cols [Fp:2Fp] = K=1 skip projection (separate block, ReLU between).
        comb = (jnp.dot(slab, wblk_ref[d], preferred_element_type=jnp.float32)
                + bblk_ref[d])
        # TODO(synk): dropout is identity in eval mode.
        x = jnp.maximum(comb[:, :Fp], 0.0) + comb[:, Fp:]
    # In/out skip-connection: concat happens in VMEM, never round-trips HBM.
    xc = jnp.concatenate([x, x0], axis=1)                        # [Np, 2*Fp]
    slab = _cheb_slab(two_l, xc, K_mix, compute_dtype)           # [Np, K_mix*2*Fp]
    o_ref[...] = (jnp.dot(slab, wmix_ref[...],
                          preferred_element_type=jnp.float32)
                  + bmix_ref[...])


# ------------------------------- JAX glue ----------------------------------

def _round_up(v, m):
    return (v + m - 1) // m * m


def build_l_hat(edge_index, num_nodes):
    """Dense scaled Laplacian used by ChebConv (sym norm, lambda_max=2.0):
       L_hat = -D^{-1/2} A D^{-1/2}."""
    src = edge_index[0]
    dst = edge_index[1]
    a = jnp.zeros((num_nodes, num_nodes), jnp.float32).at[dst, src].add(1.0)
    deg = jnp.sum(a, axis=1)
    dinv = jnp.where(deg > 0, 1.0 / jnp.sqrt(jnp.maximum(deg, 1e-12)), 0.0)
    return -(dinv[:, None] * a * dinv[None, :])


def _pack_block_params(blocks, K, Fp):
    """Per block: stacked [K*Fp, 2*Fp] weight (main cols | skip cols)."""
    w_all, b_all = [], []
    for blk in blocks:
        w_main, b_main = blk["w_main"], blk["b_main"]
        w_skip, b_skip = blk["w_skip"], blk["b_skip"]
        f_in, f_out = w_main.shape[1], w_main.shape[2]
        w = jnp.zeros((K * Fp, 2 * Fp), jnp.float32)
        for k in range(K):
            w = w.at[k * Fp:k * Fp + f_in, :f_out].set(w_main[k])
        # Skip projection touches only the T_0 (= x) rows; separate col block.
        w = w.at[:f_in, Fp:Fp + f_out].set(w_skip[0])
        b = jnp.zeros((1, 2 * Fp), jnp.float32)
        b = b.at[:, :f_out].set(b_main)
        b = b.at[:, Fp:Fp + f_out].set(b_skip)
        w_all.append(w)
        b_all.append(b)
    return jnp.stack(w_all), jnp.stack(b_all)


def _pack_mix_params(w_mix, b_mix, nh_last, f0, Fp, Cp):
    """Mix ChebConv weight laid out against concat([x_pad, x0_pad]) columns."""
    K_mix, _, n_cls = w_mix.shape
    w = jnp.zeros((K_mix * 2 * Fp, Cp), jnp.float32)
    for k in range(K_mix):
        base = k * 2 * Fp
        w = w.at[base:base + nh_last, :n_cls].set(w_mix[k, :nh_last])
        w = w.at[base + Fp:base + Fp + f0, :n_cls].set(w_mix[k, nh_last:])
    b = jnp.zeros((1, Cp), jnp.float32).at[:, :n_cls].set(b_mix)
    return w, b


def graph_resnet_forward(params, x, edge_index, *, l_dtype=jnp.float32,
                         feat_pad=128, class_pad=128):
    n, f0 = x.shape
    blocks = params["blocks"]
    depth = len(blocks)
    K = blocks[0]["w_main"].shape[0]
    nh_last = blocks[-1]["w_main"].shape[-1]
    K_mix, _, n_cls = params["w_mix"].shape

    Fp, Cp = feat_pad, class_pad
    n_pad = _round_up(n, 8)

    l_hat = build_l_hat(edge_index, n)
    two_l = jnp.zeros((n_pad, n_pad), jnp.float32)
    two_l = two_l.at[:n, :n].set(2.0 * l_hat)      # fold the recurrence's 2.0
    two_l = two_l.astype(l_dtype)                  # bf16 option for v6e/v7x
    x0 = jnp.zeros((n_pad, Fp), jnp.float32).at[:n, :f0].set(x)

    wblk, bblk = _pack_block_params(blocks, K, Fp)
    wmix, bmix = _pack_mix_params(params["w_mix"], params["b_mix"],
                                  nh_last, f0, Fp, Cp)

    kernel = functools.partial(_fused_graph_resnet_kernel, depth=depth, K=K,
                               K_mix=K_mix, Fp=Fp, compute_dtype=l_dtype)
    out = pl.pallas_call(
        kernel,
        out_shape=jax.ShapeDtypeStruct((n_pad, Cp), jnp.float32),
        in_specs=[_VMEM_SPEC] * 6,
        out_specs=_VMEM_SPEC,
        # Lift the scoped-VMEM limit so L_hat can stay fully resident for
        # larger graphs (safe on v5e/v6e/v7x; usage here is a few MiB).
        compiler_params=pltpu.CompilerParams(
            vmem_limit_bytes=48 * 1024 * 1024),
    )(two_l, x0, wblk, bblk, wmix, bmix)
    return out[:n, :n_cls]


# ----------------------------- initialization -------------------------------

def glorot(key, shape):
    # PyG glorot: uniform(-a, a) with a = sqrt(6 / (fan_in + fan_out)).
    fan_in, fan_out = shape[-2], shape[-1]
    a = jnp.sqrt(6.0 / (fan_in + fan_out))
    return jax.random.uniform(key, shape, jnp.float32, -a, a)


def init_graph_resnet_params(key, num_features, num_classes, nh, K, K_mix, depth):
    params = {"blocks": []}
    dims = [num_features] + [nh] * depth
    for i in range(depth):
        key, k1, k2 = jax.random.split(key, 3)
        params["blocks"].append({
            "w_main": glorot(k1, (K, dims[i], dims[i + 1])),
            "b_main": jnp.zeros((1, dims[i + 1]), jnp.float32),
            "w_skip": glorot(k2, (1, dims[i], dims[i + 1])),
            "b_skip": jnp.zeros((1, dims[i + 1]), jnp.float32),
        })
    key, k3 = jax.random.split(key)
    params["w_mix"] = glorot(k3, (K_mix, nh + num_features, num_classes))
    params["b_mix"] = jnp.zeros((1, num_classes), jnp.float32)
    return params


# --------------------- pure-JAX reference (correctness) ---------------------

def _cheb_ref(l_hat, x, w, b, l_dtype):
    l = l_hat.astype(l_dtype)
    K = w.shape[0]
    out = jnp.dot(x, w[0], preferred_element_type=jnp.float32)
    if K > 1:
        t_prev = x
        t_cur = jnp.dot(l, x.astype(l_dtype), preferred_element_type=jnp.float32)
        out = out + jnp.dot(t_cur, w[1], preferred_element_type=jnp.float32)
        for k in range(2, K):
            t_next = (2.0 * jnp.dot(l, t_cur.astype(l_dtype),
                                    preferred_element_type=jnp.float32)
                      - t_prev)
            out = out + jnp.dot(t_next, w[k], preferred_element_type=jnp.float32)
            t_prev, t_cur = t_cur, t_next
    return out + b


def graph_resnet_ref(params, x, edge_index, l_dtype=jnp.float32):
    l_hat = build_l_hat(edge_index, x.shape[0])
    x0 = x
    for blk in params["blocks"]:
        main = _cheb_ref(l_hat, x, blk["w_main"], blk["b_main"], l_dtype)
        skip = _cheb_ref(l_hat, x, blk["w_skip"], blk["b_skip"], l_dtype)
        x = jnp.maximum(main, 0.0) + skip
    x = jnp.concatenate([x, x0], axis=1)
    return _cheb_ref(l_hat, x, params["w_mix"], params["b_mix"], l_dtype)


# --------------------------------- main -------------------------------------

if __name__ == "__main__":
    # Small, deterministic problem: 16 nodes on a ring graph.
    N = 16
    NUM_FEATURES = 8
    NUM_CLASSES = 4
    NH = 16
    K = 6
    K_MIX = 2
    DEPTH = 3

    key = jax.random.PRNGKey(0)
    key, kx = jax.random.split(key)
    x = jax.random.normal(kx, (N, NUM_FEATURES), jnp.float32)

    # Undirected ring graph: edges (i, i+1 mod N) in both directions.
    src = jnp.arange(N, dtype=jnp.int32)
    dst = (src + 1) % N
    edge_index = jnp.stack(
        [jnp.concatenate([src, dst]), jnp.concatenate([dst, src])], axis=0)

    params = init_graph_resnet_params(
        key, NUM_FEATURES, NUM_CLASSES, NH, K, K_MIX, DEPTH)

    # Float32 path (exact-precision check against pure-JAX reference).
    out = jax.block_until_ready(graph_resnet_forward(params, x, edge_index))
    ref = graph_resnet_ref(params, x, edge_index, jnp.float32)
    assert out.shape == (N, NUM_CLASSES), out.shape
    assert jnp.allclose(out, ref, atol=1e-4, rtol=1e-4), (
        float(jnp.max(jnp.abs(out - ref))))

    # bf16 Laplacian / recurrence path (v6e/v7x MXU-friendly), checked against
    # a bf16-matched reference (f32 accumulation & carries in both).
    out_bf16 = jax.block_until_ready(
        graph_resnet_forward(params, x, edge_index, l_dtype=jnp.bfloat16))
    ref_bf16 = graph_resnet_ref(params, x, edge_index, jnp.bfloat16)
    assert out_bf16.shape == (N, NUM_CLASSES), out_bf16.shape
    assert jnp.allclose(out_bf16, ref_bf16, atol=1e-2, rtol=1e-2), (
        float(jnp.max(jnp.abs(out_bf16 - ref_bf16))))

    print("KERNEL_OK")
</pallas_src>

<mosaic_0001>
module attributes {stable_mosaic.version = 11 : i64} {
  func.func @_fused_graph_resnet_kernel(%arg0: memref<16x16xf32, #tpu.memory_space<vmem>>, %arg1: memref<16x128xf32, #tpu.memory_space<vmem>>, %arg2: memref<3x768x256xf32, #tpu.memory_space<vmem>>, %arg3: memref<3x1x256xf32, #tpu.memory_space<vmem>>, %arg4: memref<512x128xf32, #tpu.memory_space<vmem>>, %arg5: memref<1x128xf32, #tpu.memory_space<vmem>>, %arg6: memref<16x128xf32, #tpu.memory_space<vmem>>) attributes {dimension_semantics = [], scalar_prefetch = 0 : i64, scratch_operands = 0 : i64, tpu.core_type = #tpu.core_type<tc>} {
    %c0 = arith.constant 0 : index
    %c0_0 = arith.constant 0 : index
    %0 = vector.load %arg0[%c0, %c0_0] : memref<16x16xf32, #tpu.memory_space<vmem>>, vector<16x16xf32>
    %c0_1 = arith.constant 0 : index
    %c0_2 = arith.constant 0 : index
    %1 = vector.load %arg1[%c0_1, %c0_2] : memref<16x128xf32, #tpu.memory_space<vmem>>, vector<16x128xf32>
    %cst = arith.constant dense<0.000000e+00> : vector<16x128xf32>
    %2 = tpu.matmul %0, %1, %cst {dimension_numbers = #tpu.dot_dimension_numbers<[1], [0], [0], [1], [0, 0, 1, 1], [], []>} : vector<16x16xf32>, vector<16x128xf32>, vector<16x128xf32> -> vector<16x128xf32>
    %cst_3 = arith.constant 5.000000e-01 : f32
    %3 = vector.broadcast %cst_3 : f32 to vector<16x128xf32>
    %4 = arith.mulf %3, %2 : vector<16x128xf32>
    %cst_4 = arith.constant dense<0.000000e+00> : vector<16x128xf32>
    %5 = tpu.matmul %0, %4, %cst_4 {dimension_numbers = #tpu.dot_dimension_numbers<[1], [0], [0], [1], [0, 0, 1, 1], [], []>} : vector<16x16xf32>, vector<16x128xf32>, vector<16x128xf32> -> vector<16x128xf32>
    %6 = arith.subf %5, %1 : vector<16x128xf32>
    %cst_5 = arith.constant dense<0.000000e+00> : vector<16x128xf32>
    %7 = tpu.matmul %0, %6, %cst_5 {dimension_numbers = #tpu.dot_dimension_numbers<[1], [0], [0], [1], [0, 0, 1, 1], [], []>} : vector<16x16xf32>, vector<16x128xf32>, vector<16x128xf32> -> vector<16x128xf32>
    %8 = arith.subf %7, %4 : vector<16x128xf32>
    %cst_6 = arith.constant dense<0.000000e+00> : vector<16x128xf32>
    %9 = tpu.matmul %0, %8, %cst_6 {dimension_numbers = #tpu.dot_dimension_numbers<[1], [0], [0], [1], [0, 0, 1, 1], [], []>} : vector<16x16xf32>, vector<16x128xf32>, vector<16x128xf32> -> vector<16x128xf32>
    %10 = arith.subf %9, %6 : vector<16x128xf32>
    %cst_7 = arith.constant dense<0.000000e+00> : vector<16x128xf32>
    %11 = tpu.matmul %0, %10, %cst_7 {dimension_numbers = #tpu.dot_dimension_numbers<[1], [0], [0], [1], [0, 0, 1, 1], [], []>} : vector<16x16xf32>, vector<16x128xf32>, vector<16x128xf32> -> vector<16x128xf32>
    %12 = arith.subf %11, %8 : vector<16x128xf32>
    %13 = tpu.concatenate %1, %4, %6, %8, %10, %12 in 1 : vector<16x128xf32>, vector<16x128xf32>, vector<16x128xf32>, vector<16x128xf32>, vector<16x128xf32>, vector<16x128xf32> -> vector<16x768xf32>
    %c0_8 = arith.constant 0 : index
    %c0_9 = arith.constant 0 : index
    %c0_10 = arith.constant 0 : index
    %14 = vector.load %arg2[%c0_8, %c0_9, %c0_10] : memref<3x768x256xf32, #tpu.memory_space<vmem>>, vector<1x768x256xf32>
    %15 = vector.shape_cast %14 : vector<1x768x256xf32> to vector<768x256xf32>
    %cst_11 = arith.constant dense<0.000000e+00> : vector<16x256xf32>
    %16 = tpu.matmul %13, %15, %cst_11 {dimension_numbers = #tpu.dot_dimension_numbers<[1], [0], [0], [1], [0, 0, 1, 1], [], []>} : vector<16x768xf32>, vector<768x256xf32>, vector<16x256xf32> -> vector<16x256xf32>
    %c0_12 = arith.constant 0 : index
    %c0_13 = arith.constant 0 : index
    %c0_14 = arith.constant 0 : index
    %17 = vector.load %arg3[%c0_12, %c0_13, %c0_14] : memref<3x1x256xf32, #tpu.memory_space<vmem>>, vector<1x1x256xf32>
    %18 = vector.shape_cast %17 : vector<1x1x256xf32> to vector<1x256xf32>
    %19 = vector.broadcast %18 : vector<1x256xf32> to vector<16x256xf32>
    %20 = arith.addf %16, %19 : vector<16x256xf32>
    %21 = vector.extract_strided_slice %20 {offsets = [0, 0], sizes = [16, 128], strides = [1, 1]} : vector<16x256xf32> to vector<16x128xf32>
    %cst_15 = arith.constant 0.000000e+00 : f32
    %22 = vector.broadcast %cst_15 : f32 to vector<16x128xf32>
    %23 = arith.maximumf %21, %22 : vector<16x128xf32>
    %24 = vector.extract_strided_slice %20 {offsets = [0, 128], sizes = [16, 128], strides = [1, 1]} : vector<16x256xf32> to vector<16x128xf32>
    %25 = arith.addf %23, %24 : vector<16x128xf32>
    %cst_16 = arith.constant dense<0.000000e+00> : vector<16x128xf32>
    %26 = tpu.matmul %0, %25, %cst_16 {dimension_numbers = #tpu.dot_dimension_numbers<[1], [0], [0], [1], [0, 0, 1, 1], [], []>} : vector<16x16xf32>, vector<16x128xf32>, vector<16x128xf32> -> vector<16x128xf32>
    %cst_17 = arith.constant 5.000000e-01 : f32
    %27 = vector.broadcast %cst_17 : f32 to vector<16x128xf32>
    %28 = arith.mulf %27, %26 : vector<16x128xf32>
    %cst_18 = arith.constant dense<0.000000e+00> : vector<16x128xf32>
    %29 = tpu.matmul %0, %28, %cst_18 {dimension_numbers = #tpu.dot_dimension_numbers<[1], [0], [0], [1], [0, 0, 1, 1], [], []>} : vector<16x16xf32>, vector<16x128xf32>, vector<16x128xf32> -> vector<16x128xf32>
    %30 = arith.subf %29, %25 : vector<16x128xf32>
    %cst_19 = arith.constant dense<0.000000e+00> : vector<16x128xf32>
    %31 = tpu.matmul %0, %30, %cst_19 {dimension_numbers = #tpu.dot_dimension_numbers<[1], [0], [0], [1], [0, 0, 1, 1], [], []>} : vector<16x16xf32>, vector<16x128xf32>, vector<16x128xf32> -> vector<16x128xf32>
    %32 = arith.subf %31, %28 : vector<16x128xf32>
    %cst_20 = arith.constant dense<0.000000e+00> : vector<16x128xf32>
    %33 = tpu.matmul %0, %32, %cst_20 {dimension_numbers = #tpu.dot_dimension_numbers<[1], [0], [0], [1], [0, 0, 1, 1], [], []>} : vector<16x16xf32>, vector<16x128xf32>, vector<16x128xf32> -> vector<16x128xf32>
    %34 = arith.subf %33, %30 : vector<16x128xf32>
    %cst_21 = arith.constant dense<0.000000e+00> : vector<16x128xf32>
    %35 = tpu.matmul %0, %34, %cst_21 {dimension_numbers = #tpu.dot_dimension_numbers<[1], [0], [0], [1], [0, 0, 1, 1], [], []>} : vector<16x16xf32>, vector<16x128xf32>, vector<16x128xf32> -> vector<16x128xf32>
    %36 = arith.subf %35, %32 : vector<16x128xf32>
    %37 = tpu.concatenate %25, %28, %30, %32, %34, %36 in 1 : vector<16x128xf32>, vector<16x128xf32>, vector<16x128xf32>, vector<16x128xf32>, vector<16x128xf32>, vector<16x128xf32> -> vector<16x768xf32>
    %c1 = arith.constant 1 : index
    %c0_22 = arith.constant 0 : index
    %c0_23 = arith.constant 0 : index
    %38 = vector.load %arg2[%c1, %c0_22, %c0_23] : memref<3x768x256xf32, #tpu.memory_space<vmem>>, vector<1x768x256xf32>
    %39 = vector.shape_cast %38 : vector<1x768x256xf32> to vector<768x256xf32>
    %cst_24 = arith.constant dense<0.000000e+00> : vector<16x256xf32>
    %40 = tpu.matmul %37, %39, %cst_24 {dimension_numbers = #tpu.dot_dimension_numbers<[1], [0], [0], [1], [0, 0, 1, 1], [], []>} : vector<16x768xf32>, vector<768x256xf32>, vector<16x256xf32> -> vector<16x256xf32>
    %c1_25 = arith.constant 1 : index
    %c0_26 = arith.constant 0 : index
    %c0_27 = arith.constant 0 : index
    %41 = vector.load %arg3[%c1_25, %c0_26, %c0_27] : memref<3x1x256xf32, #tpu.memory_space<vmem>>, vector<1x1x256xf32>
    %42 = vector.shape_cast %41 : vector<1x1x256xf32> to vector<1x256xf32>
    %43 = vector.broadcast %42 : vector<1x256xf32> to vector<16x256xf32>
    %44 = arith.addf %40, %43 : vector<16x256xf32>
    %45 = vector.extract_strided_slice %44 {offsets = [0, 0], sizes = [16, 128], strides = [1, 1]} : vector<16x256xf32> to vector<16x128xf32>
    %cst_28 = arith.constant 0.000000e+00 : f32
    %46 = vector.broadcast %cst_28 : f32 to vector<16x128xf32>
    %47 = arith.maximumf %45, %46 : vector<16x128xf32>
    %48 = vector.extract_strided_slice %44 {offsets = [0, 128], sizes = [16, 128], strides = [1, 1]} : vector<16x256xf32> to vector<16x128xf32>
    %49 = arith.addf %47, %48 : vector<16x128xf32>
    %cst_29 = arith.constant dense<0.000000e+00> : vector<16x128xf32>
    %50 = tpu.matmul %0, %49, %cst_29 {dimension_numbers = #tpu.dot_dimension_numbers<[1], [0], [0], [1], [0, 0, 1, 1], [], []>} : vector<16x16xf32>, vector<16x128xf32>, vector<16x128xf32> -> vector<16x128xf32>
    %cst_30 = arith.constant 5.000000e-01 : f32
    %51 = vector.broadcast %cst_30 : f32 to vector<16x128xf32>
    %52 = arith.mulf %51, %50 : vector<16x128xf32>
    %cst_31 = arith.constant dense<0.000000e+00> : vector<16x128xf32>
    %53 = tpu.matmul %0, %52, %cst_31 {dimension_numbers = #tpu.dot_dimension_numbers<[1], [0], [0], [1], [0, 0, 1, 1], [], []>} : vector<16x16xf32>, vector<16x128xf32>, vector<16x128xf32> -> vector<16x128xf32>
    %54 = arith.subf %53, %49 : vector<16x128xf32>
    %cst_32 = arith.constant dense<0.000000e+00> : vector<16x128xf32>
    %55 = tpu.matmul %0, %54, %cst_32 {dimension_numbers = #tpu.dot_dimension_numbers<[1], [0], [0], [1], [0, 0, 1, 1], [], []>} : vector<16x16xf32>, vector<16x128xf32>, vector<16x128xf32> -> vector<16x128xf32>
    %56 = arith.subf %55, %52 : vector<16x128xf32>
    %cst_33 = arith.constant dense<0.000000e+00> : vector<16x128xf32>
    %57 = tpu.matmul %0, %56, %cst_33 {dimension_numbers = #tpu.dot_dimension_numbers<[1], [0], [0], [1], [0, 0, 1, 1], [], []>} : vector<16x16xf32>, vector<16x128xf32>, vector<16x128xf32> -> vector<16x128xf32>
    %58 = arith.subf %57, %54 : vector<16x128xf32>
    %cst_34 = arith.constant dense<0.000000e+00> : vector<16x128xf32>
    %59 = tpu.matmul %0, %58, %cst_34 {dimension_numbers = #tpu.dot_dimension_numbers<[1], [0], [0], [1], [0, 0, 1, 1], [], []>} : vector<16x16xf32>, vector<16x128xf32>, vector<16x128xf32> -> vector<16x128xf32>
    %60 = arith.subf %59, %56 : vector<16x128xf32>
    %61 = tpu.concatenate %49, %52, %54, %56, %58, %60 in 1 : vector<16x128xf32>, vector<16x128xf32>, vector<16x128xf32>, vector<16x128xf32>, vector<16x128xf32>, vector<16x128xf32> -> vector<16x768xf32>
    %c2 = arith.constant 2 : index
    %c0_35 = arith.constant 0 : index
    %c0_36 = arith.constant 0 : index
    %62 = vector.load %arg2[%c2, %c0_35, %c0_36] : memref<3x768x256xf32, #tpu.memory_space<vmem>>, vector<1x768x256xf32>
    %63 = vector.shape_cast %62 : vector<1x768x256xf32> to vector<768x256xf32>
    %cst_37 = arith.constant dense<0.000000e+00> : vector<16x256xf32>
    %64 = tpu.matmul %61, %63, %cst_37 {dimension_numbers = #tpu.dot_dimension_numbers<[1], [0], [0], [1], [0, 0, 1, 1], [], []>} : vector<16x768xf32>, vector<768x256xf32>, vector<16x256xf32> -> vector<16x256xf32>
    %c2_38 = arith.constant 2 : index
    %c0_39 = arith.constant 0 : index
    %c0_40 = arith.constant 0 : index
    %65 = vector.load %arg3[%c2_38, %c0_39, %c0_40] : memref<3x1x256xf32, #tpu.memory_space<vmem>>, vector<1x1x256xf32>
    %66 = vector.shape_cast %65 : vector<1x1x256xf32> to vector<1x256xf32>
    %67 = vector.broadcast %66 : vector<1x256xf32> to vector<16x256xf32>
    %68 = arith.addf %64, %67 : vector<16x256xf32>
    %69 = vector.extract_strided_slice %68 {offsets = [0, 0], sizes = [16, 128], strides = [1, 1]} : vector<16x256xf32> to vector<16x128xf32>
    %cst_41 = arith.constant 0.000000e+00 : f32
    %70 = vector.broadcast %cst_41 : f32 to vector<16x128xf32>
    %71 = arith.maximumf %69, %70 : vector<16x128xf32>
    %72 = vector.extract_strided_slice %68 {offsets = [0, 128], sizes = [16, 128], strides = [1, 1]} : vector<16x256xf32> to vector<16x128xf32>
    %73 = arith.addf %71, %72 : vector<16x128xf32>
    %74 = tpu.concatenate %73, %1 in 1 : vector<16x128xf32>, vector<16x128xf32> -> vector<16x256xf32>
    %cst_42 = arith.constant dense<0.000000e+00> : vector<16x256xf32>
    %75 = tpu.matmul %0, %74, %cst_42 {dimension_numbers = #tpu.dot_dimension_numbers<[1], [0], [0], [1], [0, 0, 1, 1], [], []>} : vector<16x16xf32>, vector<16x256xf32>, vector<16x256xf32> -> vector<16x256xf32>
    %cst_43 = arith.constant 5.000000e-01 : f32
    %76 = vector.broadcast %cst_43 : f32 to vector<16x256xf32>
    %77 = arith.mulf %76, %75 : vector<16x256xf32>
    %78 = tpu.concatenate %74, %77 in 1 : vector<16x256xf32>, vector<16x256xf32> -> vector<16x512xf32>
    %c0_44 = arith.constant 0 : index
    %c0_45 = arith.constant 0 : index
    %79 = vector.load %arg4[%c0_44, %c0_45] : memref<512x128xf32, #tpu.memory_space<vmem>>, vector<512x128xf32>
    %cst_46 = arith.constant dense<0.000000e+00> : vector<16x128xf32>
    %80 = tpu.matmul %78, %79, %cst_46 {dimension_numbers = #tpu.dot_dimension_numbers<[1], [0], [0], [1], [0, 0, 1, 1], [], []>} : vector<16x512xf32>, vector<512x128xf32>, vector<16x128xf32> -> vector<16x128xf32>
    %c0_47 = arith.constant 0 : index
    %c0_48 = arith.constant 0 : index
    %81 = vector.load %arg5[%c0_47, %c0_48] : memref<1x128xf32, #tpu.memory_space<vmem>>, vector<1x128xf32>
    %82 = vector.broadcast %81 : vector<1x128xf32> to vector<16x128xf32>
    %83 = arith.addf %80, %82 : vector<16x128xf32>
    %c0_49 = arith.constant 0 : index
    %c0_50 = arith.constant 0 : index
    %84 = vector.load %arg6[%c0_49, %c0_50] : memref<16x128xf32, #tpu.memory_space<vmem>>, vector<16x128xf32>
    tpu.vector_store %arg6[%c0_49, %c0_50], %83 {strides = array<i32>} : memref<16x128xf32, #tpu.memory_space<vmem>>, vector<16x128xf32>,
    return
  }
}

</mosaic_0001>

<bundles_post_ra>
// kernel: tpu_custom_call.1
= control target key start
LH: loop header
LB: loop body
LE: loop exit
PB: predicated region body
PF: predicated region fallthrough
CT: control target
= control target key end

     0   :  { %11 = vsyncpa [#allocation3], 0  ;;  %s4486_s0 = inlined_call_operand.hbm [shape: f32[16,16], index: 0, kind: input, shape index: {}]   ;;  %s4487_s1 = inlined_call_operand.hbm [shape: f32[16,128], index: 1, kind: input, shape index: {}]   ;;  %s4488_s2 = inlined_call_operand.hbm [shape: f32[3,768,256], index: 2, kind: input, shape index: {}]   ;;  %s4489_s3 = inlined_call_operand.hbm [shape: f32[3,1,256], index: 3, kind: input, shape index: {}]   ;;  %s4490_s4 = inlined_call_operand.hbm [shape: f32[512,128], index: 4, kind: input, shape index: {}]   ;;  %s4491_s5 = inlined_call_operand.hbm [shape: f32[1,128], index: 5, kind: input, shape index: {}]   ;;  %s4492_s6 = inlined_call_operand.hbm [shape: f32[16,128], index: 6, kind: output, shape index: {}]  }
   0x1   :  { %12 = vsyncpa [#allocation6], 0 }
   0x2   :  { %13 = vsyncpa [#allocation9], 0 }
   0x3   :  { %14 = vsyncpa [#allocation12], 0 }
   0x4   :  { %15 = vsyncpa [#allocation4], 0  ;;  %s4113_s21 = smov [#allocation5]   ;;  %s4114_s23 = smov [#allocation8]  }
   0x5   :  { %s33_s22 = sshll.u32 %s4113_s21, 4  ;;  %s57_s24 = sshll.u32 %s4114_s23, 4  ;;  %s34_s22 = int_to_ptr.vmem [resolvable:$true] %s33_s22  ;;  %s4162_s24 = int_to_ptr.vmem [resolvable:$true] %s57_s24 }
   0x6   :  { %s3949_s27 = scalar_lea.hbm %s4487_s1, 256 }
   0x7   :  { %p3950_p0 = scmp.ne.s32.totalorder %s4487_s1, %s3949_s27  ;;  %p3953_p1 = scmp.lt.u32.totalorder %s3949_s27, %s4487_s1 }
   0x9   :  { %p3955_p2 = pnand %p3953_p1, %p3950_p0 }
   0xb   :  { %3958 = shalt.err (!%p3955_p2)
}
   0xc   :  { %s3959_s8 = scalar_lea.vmem %s34_s22, 256  ;;  %p3964_p4 = scmp.lt.s32.totalorder %s34_s22, %s34_s22 }
   0xd   :  { %p3960_p3 = scmp.ne.s32.totalorder %s34_s22, %s3959_s8  ;;  %p3965_p5 = scmp.lt.s32.totalorder %s3959_s8, %s3959_s8 }
   0xf   :  { %p3966_p6 = por %p3965_p5, %p3964_p4 }
  0x11   :  { %p3967_p7 = pnand %p3966_p6, %p3960_p3 }
  0x13   :  { %3970 = shalt.err (!%p3967_p7)
}
  0x14   :  { %s4115_s9 = smov 128   ;;  %s4116_s10 = smov 8  }
  0x15   :  { %39 = dma.hbm_to_vmem [thread:$0]  %s4487_s1, 256, %s34_s22, [#allocation6], %s4115_s9, %s4115_s9, %s4116_s10  }
  0x16   :  { %s3971_s15 = scalar_lea.hbm %s4489_s3, 96 }
  0x17   :  { %p3972_p8 = scmp.ne.s32.totalorder %s4489_s3, %s3971_s15  ;;  %p3975_p9 = scmp.lt.u32.totalorder %s3971_s15, %s4489_s3 }
  0x19   :  { %p3977_p10 = pnand %p3975_p9, %p3972_p8 }
  0x1b   :  { %3980 = shalt.err (!%p3977_p10)
}
  0x1c   :  { %s3981_s20 = scalar_lea.vmem %s4162_s24, 96  ;;  %p3986_p12 = scmp.lt.s32.totalorder %s4162_s24, %s4162_s24 }
  0x1d   :  { %p3982_p11 = scmp.ne.s32.totalorder %s4162_s24, %s3981_s20  ;;  %p3987_p13 = scmp.lt.s32.totalorder %s3981_s20, %s3981_s20 }
  0x1f   :  { %p3988_p0 = por %p3987_p13, %p3986_p12 }
  0x21   :  { %p3989_p1 = pnand %p3988_p0, %p3982_p11 }
  0x23   :  { %3992 = shalt.err (!%p3989_p1)
}
  0x24   :  { %s4117_s1 = smov 32   ;;  %s4118_s21 = smov 2  }
  0x25   :  { %63 = dma.hbm_to_vmem [thread:$0]  %s4489_s3, 96, %s4162_s24, [#allocation9], %s4117_s1, %s4117_s1, %s4118_s21  }
  0x26   :  { %s4119_s25 = smov [#allocation2]   ;;  %s4120_s27 = smov [#allocation7]  }
  0x27   :  { %s21_s26 = sshll.u32 %s4119_s25, 4  ;;  %s45_s28 = sshll.u32 %s4120_s27, 4  ;;  %s22_s26 = int_to_ptr.vmem [resolvable:$true] %s21_s26  ;;  %s4196_s28 = int_to_ptr.vmem [resolvable:$true] %s45_s28 }
  0x28   :  { %s3993_s7 = scalar_lea.hbm %s4486_s0, 256 }
  0x29   :  { %p3994_p2 = scmp.ne.s32.totalorder %s4486_s0, %s3993_s7  ;;  %p3997_p3 = scmp.lt.u32.totalorder %s3993_s7, %s4486_s0 }
  0x2b   :  { %p3999_p4 = pnand %p3997_p3, %p3994_p2 }
  0x2d   :  { %4002 = shalt.err (!%p3999_p4)
}
  0x2e   :  { %s4003_s3 = scalar_lea.vmem %s22_s26, 256  ;;  %p4008_p6 = scmp.lt.s32.totalorder %s22_s26, %s22_s26 }
  0x2f   :  { %p4004_p5 = scmp.ne.s32.totalorder %s22_s26, %s4003_s3  ;;  %p4009_p7 = scmp.lt.s32.totalorder %s4003_s3, %s4003_s3 }
  0x31   :  { %p4010_p8 = por %p4009_p7, %p4008_p6 }
  0x33   :  { %p4011_p9 = pnand %p4010_p8, %p4004_p5 }
  0x35   :  { %4014 = shalt.err (!%p4011_p9)
}
  0x36   :  { %27 = dma.hbm_to_vmem [thread:$0]  %s4486_s0, 256, %s22_s26, [#allocation3], %s4115_s9, %s4115_s9, %s4116_s10  }
  0x37   :  { %s4015_s17 = scalar_lea.hbm %s4488_s2, 73728 }
  0x38   :  { %p4016_p10 = scmp.ne.s32.totalorder %s4488_s2, %s4015_s17  ;;  %p4019_p11 = scmp.lt.u32.totalorder %s4015_s17, %s4488_s2 }
  0x3a   :  { %p4021_p12 = pnand %p4019_p11, %p4016_p10 }
  0x3c   :  { %4024 = shalt.err (!%p4021_p12)
}
  0x3d   :  { %s4025_s21 = scalar_lea.vmem %s4196_s28, 73728  ;;  %p4030_p0 = scmp.lt.s32.totalorder %s4196_s28, %s4196_s28 }
  0x3e   :  { %p4026_p13 = scmp.ne.s32.totalorder %s4196_s28, %s4025_s21  ;;  %p4031_p1 = scmp.lt.s32.totalorder %s4025_s21, %s4025_s21 }
  0x40   :  { %p4032_p2 = por %p4031_p1, %p4030_p0 }
  0x42   :  { %p4033_p3 = pnand %p4032_p2, %p4026_p13 }
  0x44   :  { %4036 = shalt.err (!%p4033_p3)
}
  0x45   :  { %s4121_s0 = smov 256   ;;  %s4122_s22 = smov 16  }
  0x46   :  { %51 = dma.hbm_to_vmem [thread:$0]  %s4488_s2, 73728, %s4196_s28, [#allocation6], %s4121_s0, %s4121_s0, %s4122_s22  }
  0x47   :  { %s4123_s26 = smov [#allocation10]   ;;  %s4124_s29 = smov [#allocation11]  }
  0x48   :  { %s69_s27 = sshll.u32 %s4123_s26, 4  ;;  %s82_s30 = sshll.u32 %s4124_s29, 4  ;;  %s70_s27 = int_to_ptr.vmem [resolvable:$true] %s69_s27  ;;  %s83_s30 = int_to_ptr.vmem [resolvable:$true] %s82_s30 }
  0x49   :  { %s4037_s11 = scalar_lea.hbm %s4490_s4, 8192 }
  0x4a   :  { %p4038_p4 = scmp.ne.s32.totalorder %s4490_s4, %s4037_s11  ;;  %p4041_p5 = scmp.lt.u32.totalorder %s4037_s11, %s4490_s4 }
  0x4c   :  { %p4043_p6 = pnand %p4041_p5, %p4038_p4 }
  0x4e   :  { %4046 = shalt.err (!%p4043_p6)
}
  0x4f   :  { %s4047_s2 = scalar_lea.vmem %s70_s27, 8192  ;;  %p4052_p8 = scmp.lt.s32.totalorder %s70_s27, %s70_s27 }
  0x50   :  { %p4048_p7 = scmp.ne.s32.totalorder %s70_s27, %s4047_s2  ;;  %p4053_p9 = scmp.lt.s32.totalorder %s4047_s2, %s4047_s2 }
  0x52   :  { %p4054_p10 = por %p4053_p9, %p4052_p8 }
  0x54   :  { %p4055_p11 = pnand %p4054_p10, %p4048_p7 }
  0x56   :  { %4058 = shalt.err (!%p4055_p11)
}
  0x57   :  { %75 = dma.hbm_to_vmem [thread:$0]  %s4490_s4, 8192, %s70_s27, [#allocation9], %s4115_s9, %s4115_s9, %s4116_s10  }
  0x58   :  { %s4059_s17 = scalar_lea.hbm %s4491_s5, 16 }
  0x59   :  { %p4060_p12 = scmp.ne.s32.totalorder %s4491_s5, %s4059_s17  ;;  %p4063_p13 = scmp.lt.u32.totalorder %s4059_s17, %s4491_s5 }
  0x5b   :  { %p4065_p0 = pnand %p4063_p13, %p4060_p12 }
  0x5d   :  { %4068 = shalt.err (!%p4065_p0)
}
  0x5e   :  { %s4069_s21 = scalar_lea.vmem %s83_s30, 16  ;;  %s4073_s0 = scalar_lea.vmem %s83_s30, 32 }
  0x5f   :  { %p4070_p1 = scmp.ne.s32.totalorder %s83_s30, %s4069_s21  ;;  %p4074_p2 = scmp.lt.s32.totalorder %s83_s30, %s83_s30 }
  0x60   :  { %p4075_p3 = scmp.lt.s32.totalorder %s4073_s0, %s4069_s21 }
  0x62   :  { %p4076_p4 = por %p4075_p3, %p4074_p2 }
  0x64   :  { %p4077_p5 = pnand %p4076_p4, %p4070_p1 }
  0x66   :  { %4080 = shalt.err (!%p4077_p5)
}
  0x67   :  { %85 = dma.hbm_to_vmem [thread:$0]  %s4491_s5, 16, %s83_s30, [#allocation12]  }
  0x68   :  { %4103 = dma.done.wait [#allocation3], 256  }
  0x69   :  { %4104 = vsyncadd [#allocation3], 4294967040 }
  0x6a   :  { %4105 = dma.done.wait [#allocation6], 73984  }
  0x6b   :  { %4106 = vsyncadd [#allocation6], 4294893312 }
  0x6c   :  { %4107 = dma.done.wait [#allocation9], 8288  }
  0x6d   :  { %4108 = vsyncadd [#allocation9], 4294959008 }
  0x6e   :  { %4109 = dma.done.wait [#allocation12], 16  }
  0x6f   :  { %4110 = vsyncadd [#allocation12], 4294967280  ;;  %vm108_vm0 = vcmask 130048   ;;  %v4257_v0 = vld [vmem:[#allocation5] sm:$0xff]  ;;  %v4259_v1 = vld [vmem:[#allocation5 + $0x8] sm:$0xff]  ;;  %s4126_s5 = smov [#allocation13]  }
  0x70   :  { %v4261_v2 = vld [vmem:[#allocation2] sm:$0xff]  ;;  %v4265_v3 = vpack.c.bf16 %v4259_v1, %v4257_v0  ;;  %v4273_v4 = vld [vmem:[#allocation2 + $0x8] sm:$0xff]  ;;  %v503_v19 = vld [vmem:[#allocation7 + $0x18] sm:$0xff]  ;;  %s2900_s23 = sshll.u32 %s4126_s5, 4  ;;  %s2901_s23 = int_to_ptr.vmem [resolvable:$true] %s2900_s23 }
  0x71   :  { %3088 = vmatprep.mubr.msk.f32.mxu0 %vm108_vm0, %v4261_v2  ;;  %3095 = vmatprep.mubr.msk.f32.mxu1 %vm108_vm0, %v4261_v2  ;;  %v501_v18 = vld [vmem:[#allocation7 + $0x8] sm:$0xff]  ;;  %v500_v23 = vld [vmem:[#allocation7] sm:$0xff]  ;;  %v502_v24 = vld [vmem:[#allocation7 + $0x10] sm:$0xff]  ;;  %s4081_s25 = scalar_lea.vmem %s2901_s23, 256  ;;  %p4086_p7 = scmp.lt.s32.totalorder %s2901_s23, %s2901_s23 }
  0x72   :  { %3190 = vmatprep.subr.bf16.mxu0 %v4265_v3  ;;  %v3209_v22 = vpack.c.bf16 %v503_v19, %v501_v18  ;;  %v505_v25 = vld [vmem:[#allocation7 + $0x28] sm:$0xff]  ;;  %v507_v26 = vld [vmem:[#allocation7 + $0x38] sm:$0xff]  ;;  %v3211_v27 = vpack.c.bf16 %v502_v24, %v500_v23  ;;  %v504_v29 = vld [vmem:[#allocation7 + $0x20] sm:$0xff]  ;;  %p4082_p6 = scmp.ne.s32.totalorder %s2901_s23, %s4081_s25  ;;  %p4087_p8 = scmp.lt.s32.totalorder %s4081_s25, %s4081_s25 }
  0x73   :  { %3192 = vmatpush3.bf16.msra.mxu0 %v4265_v3  ;;  %v3213_v28 = vpack.c.bf16 %v507_v26, %v505_v25  ;;  %v506_v30 = vld [vmem:[#allocation7 + $0x30] sm:$0xff]  ;;  %v509_v31 = vld [vmem:[#allocation7 + $0x48] sm:$0xff]  ;;  %v511_v32 = vld [vmem:[#allocation7 + $0x58] sm:$0xff] }
  0x74   :  { %v3215_v33 = vpack.c.bf16 %v506_v30, %v504_v29  ;;  %v3217_v34 = vpack.c.bf16 %v511_v32, %v509_v31  ;;  %v508_v35 = vld [vmem:[#allocation7 + $0x40] sm:$0xff]  ;;  %v510_v36 = vld [vmem:[#allocation7 + $0x50] sm:$0xff]  ;;  %v513_v37 = vld [vmem:[#allocation7 + $0x68] sm:$0xff]  ;;  %p4088_p9 = por %p4087_p8, %p4086_p7 }
  0x75   :  { %v515_v38 = vld [vmem:[#allocation7 + $0x78] sm:$0xff]  ;;  %v3219_v39 = vpack.c.bf16 %v510_v36, %v508_v35  ;;  %v512_v41 = vld [vmem:[#allocation7 + $0x60] sm:$0xff]  ;;  %v514_v42 = vld [vmem:[#allocation7 + $0x70] sm:$0xff] }
  0x76   :  { %3089 = vmatmul.mubr.msk.f32.vlgmr.msra.gmra.mrb[0].mxu0 %vm108_vm0, %v4273_v4  ;;  %v3221_v40 = vpack.c.bf16 %v515_v38, %v513_v37  ;;  %v517_v43 = vld [vmem:[#allocation7 + $0x88] sm:$0xff]  ;;  %v519_v44 = vld [vmem:[#allocation7 + $0x98] sm:$0xff]  ;;  %v3223_v45 = vpack.c.bf16 %v514_v42, %v512_v41  ;;  %v516_v47 = vld [vmem:[#allocation7 + $0x80] sm:$0xff]  ;;  %p4089_p10 = pnand %p4088_p9, %p4082_p6 }
  0x77   :  { %3102 = vmatprep.mubr.msk.f32.mxu0 %vm108_vm0, %v4261_v2  ;;  %v3225_v46 = vpack.c.bf16 %v519_v44, %v517_v43  ;;  %v518_v48 = vld [vmem:[#allocation7 + $0x90] sm:$0xff]  ;;  %v521_v49 = vld [vmem:[#allocation7 + $0xa8] sm:$0xff]  ;;  %v523_v50 = vld [vmem:[#allocation7 + $0xb8] sm:$0xff] }
  0x78   :  { %v3227_v51 = vpack.c.bf16 %v518_v48, %v516_v47  ;;  %v3229_v52 = vpack.c.bf16 %v523_v50, %v521_v49  ;;  %v520_v53 = vld [vmem:[#allocation7 + $0xa0] sm:$0xff]  ;;  %v522_v54 = vld [vmem:[#allocation7 + $0xb0] sm:$0xff]  ;;  %v525_v55 = vld [vmem:[#allocation7 + $0xc8] sm:$0xff] }
  0x79   :  { %v527_v56 = vld [vmem:[#allocation7 + $0xd8] sm:$0xff]  ;;  %v3231_v57 = vpack.c.bf16 %v522_v54, %v520_v53  ;;  %v524_v59 = vld [vmem:[#allocation7 + $0xc0] sm:$0xff]  ;;  %v526_v60 = vld [vmem:[#allocation7 + $0xd0] sm:$0xff] }
  0x7a   :  { %v3233_v58 = vpack.c.bf16 %v527_v56, %v525_v55  ;;  %v529_v61 = vld [vmem:[#allocation7 + $0xe8] sm:$0xff]  ;;  %v531_v62 = vld [vmem:[#allocation7 + $0xf8] sm:$0xff]  ;;  %v3235_v63 = vpack.c.bf16 %v526_v60, %v524_v59  ;;  %v536_v23 = vld [vmem:[#allocation7 + $0x120] sm:$0xff] }
  0x7b   :  { %v537_v18 = vld [vmem:[#allocation7 + $0x128] sm:$0xff]  ;;  %v539_v19 = vld [vmem:[#allocation7 + $0x138] sm:$0xff]  ;;  %v538_v24 = vld [vmem:[#allocation7 + $0x130] sm:$0xff] }
  0x7c   :  { %v541_v25 = vld [vmem:[#allocation7 + $0x148] sm:$0xff]  ;;  %v543_v26 = vld [vmem:[#allocation7 + $0x158] sm:$0xff]  ;;  %v540_v29 = vld [vmem:[#allocation7 + $0x140] sm:$0xff] }
  0x7d   :  { %v542_v30 = vld [vmem:[#allocation7 + $0x150] sm:$0xff]  ;;  %v545_v31 = vld [vmem:[#allocation7 + $0x168] sm:$0xff]  ;;  %v547_v32 = vld [vmem:[#allocation7 + $0x178] sm:$0xff] }
  0x7e   :  { %v544_v35 = vld [vmem:[#allocation7 + $0x160] sm:$0xff]  ;;  %v546_v36 = vld [vmem:[#allocation7 + $0x170] sm:$0xff]  ;;  %v549_v37 = vld [vmem:[#allocation7 + $0x188] sm:$0xff] }
  0x7f   :  { %v551_v38 = vld [vmem:[#allocation7 + $0x198] sm:$0xff]  ;;  %v548_v41 = vld [vmem:[#allocation7 + $0x180] sm:$0xff]  ;;  %v550_v42 = vld [vmem:[#allocation7 + $0x190] sm:$0xff] }
  0x80   :  { %v553_v43 = vld [vmem:[#allocation7 + $0x1a8] sm:$0xff]  ;;  %v555_v44 = vld [vmem:[#allocation7 + $0x1b8] sm:$0xff]  ;;  %v552_v47 = vld [vmem:[#allocation7 + $0x1a0] sm:$0xff] }
  0x81   :  { %v554_v48 = vld [vmem:[#allocation7 + $0x1b0] sm:$0xff]  ;;  %v557_v49 = vld [vmem:[#allocation7 + $0x1c8] sm:$0xff]  ;;  %v559_v50 = vld [vmem:[#allocation7 + $0x1d8] sm:$0xff] }
  0x82   :  { %v556_v53 = vld [vmem:[#allocation7 + $0x1c0] sm:$0xff]  ;;  %v558_v54 = vld [vmem:[#allocation7 + $0x1d0] sm:$0xff]  ;;  %v561_v55 = vld [vmem:[#allocation7 + $0x1e8] sm:$0xff] }
  0x83   :  { %v563_v56 = vld [vmem:[#allocation7 + $0x1f8] sm:$0xff]  ;;  %v560_v59 = vld [vmem:[#allocation7 + $0x1e0] sm:$0xff]  ;;  %v562_v60 = vld [vmem:[#allocation7 + $0x1f0] sm:$0xff] }
 0x149   :  { %v3090_v5 = vpop.f32.mrb[0].mxu0 }
 0x14a   :  { %v4279_v6 = vmul.f32 0.5, %v3090_v5  ;;  %v181_v7 = vpop.f32.mrb[1].mxu0  ;;  %v3237_v5 = vpack.c.bf16 %v531_v62, %v529_v61  ;;  %v565_v61 = vld [vmem:[#allocation7 + $0x208] sm:$0xff]  ;;  %v567_v62 = vld [vmem:[#allocation7 + $0x218] sm:$0xff] }
 0x14b   :  { %v190_v8 = vmul.f32 0.5, %v181_v7  ;;  %v528_v7 = vld [vmem:[#allocation7 + $0xe0] sm:$0xff] }
 0x14d   :  { %v3193_v9 = vpack.c.bf16 %v4279_v6, %v190_v8 }
 0x14f   :  { %3194 = vmatprep.subr.bf16.mxu1 %v3193_v9 }
 0x150   :  { %3196 = vmatpush3.bf16.msra.mxu1 %v3193_v9  ;;  %v533_v9 = vld [vmem:[#allocation7 + $0x108] sm:$0xff] }
 0x153   :  { %3096 = vmatmul.mubr.msk.f32.vlgmr.msra.gmra.mrb[0].mxu1 %vm108_vm0, %v4273_v4 }
 0x154   :  { %3109 = vmatprep.mubr.msk.f32.mxu1 %vm108_vm0, %v4261_v2 }
 0x226   :  { %v3097_v10 = vpop.f32.mrb[0].mxu1 }
 0x227   :  { %v4287_v11 = vsub.f32 %v3097_v10, %v4259_v1  ;;  %v258_v12 = vpop.f32.mrb[1].mxu1  ;;  %v535_v10 = vld [vmem:[#allocation7 + $0x118] sm:$0xff] }
 0x228   :  { %v4290_v13 = vsub.f32 %v258_v12, %v4257_v0 }
 0x22a   :  { %v3197_v14 = vpack.c.bf16 %v4287_v11, %v4290_v13 }
 0x22c   :  { %3198 = vmatprep.subr.bf16.mxu0 %v3197_v14 }
 0x22d   :  { %3200 = vmatpush3.bf16.msra.mxu0 %v3197_v14  ;;  %v3241_v14 = vpack.c.bf16 %v535_v10, %v533_v9  ;;  %v569_v9 = vld [vmem:[#allocation7 + $0x228] sm:$0xff]  ;;  %v571_v10 = vld [vmem:[#allocation7 + $0x238] sm:$0xff] }
 0x230   :  { %3103 = vmatmul.mubr.msk.f32.vlgmr.msra.gmra.mrb[2].mxu0 %vm108_vm0, %v4273_v4 }
 0x231   :  { %3116 = vmatprep.mubr.msk.f32.mxu0 %vm108_vm0, %v4261_v2 }
 0x303   :  { %v3104_v15 = vpop.f32.mrb[2].mxu0 }
 0x304   :  { %v4299_v16 = vsub.f32 %v3104_v15, %v4279_v6  ;;  %v335_v17 = vpop.f32.mrb[3].mxu0  ;;  %v532_v15 = vld [vmem:[#allocation7 + $0x100] sm:$0xff] }
 0x305   :  { %v4301_v20 = vsub.f32 %v335_v17, %v190_v8  ;;  %v534_v17 = vld [vmem:[#allocation7 + $0x110] sm:$0xff] }
 0x307   :  { %v3201_v21 = vpack.c.bf16 %v4299_v16, %v4301_v20 }
 0x309   :  { %3202 = vmatprep.subr.bf16.mxu1 %v3201_v21 }
 0x30a   :  { %3204 = vmatpush3.bf16.msra.mxu1 %v3201_v21  ;;  %v3243_v21 = vpack.c.bf16 %v534_v17, %v532_v15  ;;  %v568_v15 = vld [vmem:[#allocation7 + $0x220] sm:$0xff]  ;;  %v570_v17 = vld [vmem:[#allocation7 + $0x230] sm:$0xff] }
 0x30b   :  { %3210 = vmatprep.subr.bf16.mxu1 %v3209_v22  ;;  %v3245_v22 = vpack.c.bf16 %v539_v19, %v537_v18  ;;  %v573_v18 = vld [vmem:[#allocation7 + $0x248] sm:$0xff]  ;;  %v575_v19 = vld [vmem:[#allocation7 + $0x258] sm:$0xff] }
 0x30d   :  { %3110 = vmatmul.mubr.msk.f32.vlgmr.msra.gmra.mrb[2].mxu1 %vm108_vm0, %v4273_v4 }
 0x30e   :  { %3212 = vmatpush1.bf16.msra.mxu1 %v3211_v27  ;;  %768 = vmatprep.mubr.f32.mxu1 %v190_v8  ;;  %v530_v8 = vld [vmem:[#allocation7 + $0xf0] sm:$0xff]  ;;  %v3247_v27 = vpack.c.bf16 %v538_v24, %v536_v23  ;;  %v572_v23 = vld [vmem:[#allocation7 + $0x240] sm:$0xff] }
 0x30f   :  { %3214 = vmatprep.subr.bf16.mxu1 %v3213_v28  ;;  %v3239_v12 = vpack.c.bf16 %v530_v8, %v528_v7  ;;  %v3249_v28 = vpack.c.bf16 %v543_v26, %v541_v25  ;;  %v564_v7 = vld [vmem:[#allocation7 + $0x200] sm:$0xff]  ;;  %v566_v8 = vld [vmem:[#allocation7 + $0x210] sm:$0xff]  ;;  %v577_v25 = vld [vmem:[#allocation7 + $0x268] sm:$0xff] }
 0x310   :  { %v574_v24 = vld [vmem:[#allocation7 + $0x250] sm:$0xff]  ;;  %v579_v26 = vld [vmem:[#allocation7 + $0x278] sm:$0xff] }
 0x312   :  { %3216 = vmatpush1.bf16.msra.mxu1 %v3215_v33  ;;  %v3251_v33 = vpack.c.bf16 %v542_v30, %v540_v29  ;;  %v576_v29 = vld [vmem:[#allocation7 + $0x260] sm:$0xff]  ;;  %v581_v30 = vld [vmem:[#allocation7 + $0x288] sm:$0xff] }
 0x313   :  { %3218 = vmatprep.subr.bf16.mxu1 %v3217_v34  ;;  %v3253_v34 = vpack.c.bf16 %v547_v32, %v545_v31 }
 0x316   :  { %3220 = vmatpush1.bf16.msra.mxu1 %v3219_v39  ;;  %v3255_v39 = vpack.c.bf16 %v546_v36, %v544_v35  ;;  %v585_v35 = vld [vmem:[#allocation7 + $0x2a8] sm:$0xff]  ;;  %v587_v36 = vld [vmem:[#allocation7 + $0x2b8] sm:$0xff] }
 0x317   :  { %3222 = vmatprep.subr.bf16.mxu1 %v3221_v40  ;;  %v3257_v40 = vpack.c.bf16 %v551_v38, %v549_v37  ;;  %v3293_v37 = vpack.c.bf16 %v587_v36, %v585_v35  ;;  %v584_v38 = vld [vmem:[#allocation7 + $0x2a0] sm:$0xff] }
 0x318   :  { %v620_v36 = vld [vmem:[#allocation7 + $0x3c0] sm:$0xff] }
 0x31a   :  { %3224 = vmatpush1.bf16.msra.mxu1 %v3223_v45  ;;  %v3259_v45 = vpack.c.bf16 %v550_v42, %v548_v41  ;;  %v591_v41 = vld [vmem:[#allocation7 + $0x2d8] sm:$0xff] }
 0x31b   :  { %3226 = vmatprep.subr.bf16.mxu1 %v3225_v46  ;;  %v3261_v46 = vpack.c.bf16 %v555_v44, %v553_v43  ;;  %v588_v44 = vld [vmem:[#allocation7 + $0x2c0] sm:$0xff] }
 0x31e   :  { %3228 = vmatpush1.bf16.msra.mxu1 %v3227_v51  ;;  %v3263_v51 = vpack.c.bf16 %v554_v48, %v552_v47  ;;  %v595_v47 = vld [vmem:[#allocation7 + $0x2f8] sm:$0xff] }
 0x31f   :  { %3230 = vmatprep.subr.bf16.mxu1 %v3229_v52  ;;  %v3265_v52 = vpack.c.bf16 %v559_v50, %v557_v49  ;;  %v592_v50 = vld [vmem:[#allocation7 + $0x2e0] sm:$0xff] }
 0x322   :  { %3232 = vmatpush1.bf16.msra.mxu1 %v3231_v57  ;;  %v3267_v57 = vpack.c.bf16 %v558_v54, %v556_v53  ;;  %v599_v53 = vld [vmem:[#allocation7 + $0x318] sm:$0xff] }
 0x323   :  { %3234 = vmatprep.subr.bf16.mxu1 %v3233_v58  ;;  %v3269_v58 = vpack.c.bf16 %v563_v56, %v561_v55  ;;  %v596_v56 = vld [vmem:[#allocation7 + $0x300] sm:$0xff] }
 0x326   :  { %3236 = vmatpush1.bf16.msra.mxu1 %v3235_v63  ;;  %v3271_v63 = vpack.c.bf16 %v562_v60, %v560_v59  ;;  %v603_v59 = vld [vmem:[#allocation7 + $0x338] sm:$0xff] }
 0x327   :  { %3238 = vmatprep.subr.bf16.mxu1 %v3237_v5  ;;  %v3273_v5 = vpack.c.bf16 %v567_v62, %v565_v61  ;;  %v600_v62 = vld [vmem:[#allocation7 + $0x320] sm:$0xff] }
 0x32a   :  { %3240 = vmatpush1.bf16.msra.mxu1 %v3239_v12  ;;  %v3275_v12 = vpack.c.bf16 %v566_v8, %v564_v7  ;;  %v607_v7 = vld [vmem:[#allocation7 + $0x358] sm:$0xff] }
 0x32b   :  { %3242 = vmatprep.subr.bf16.mxu1 %v3241_v14  ;;  %v3277_v14 = vpack.c.bf16 %v571_v10, %v569_v9  ;;  %v604_v10 = vld [vmem:[#allocation7 + $0x340] sm:$0xff] }
 0x32e   :  { %3244 = vmatpush1.bf16.msra.mxu1 %v3243_v21  ;;  %v3279_v21 = vpack.c.bf16 %v570_v17, %v568_v15  ;;  %v611_v15 = vld [vmem:[#allocation7 + $0x378] sm:$0xff] }
 0x32f   :  { %3246 = vmatprep.subr.bf16.mxu1 %v3245_v22  ;;  %v3281_v22 = vpack.c.bf16 %v575_v19, %v573_v18  ;;  %v608_v19 = vld [vmem:[#allocation7 + $0x360] sm:$0xff] }
 0x332   :  { %3248 = vmatpush1.bf16.msra.mxu1 %v3247_v27  ;;  %v3283_v27 = vpack.c.bf16 %v574_v24, %v572_v23  ;;  %v615_v23 = vld [vmem:[#allocation7 + $0x398] sm:$0xff] }
 0x333   :  { %3250 = vmatprep.subr.bf16.mxu1 %v3249_v28  ;;  %v3285_v28 = vpack.c.bf16 %v579_v26, %v577_v25  ;;  %v612_v26 = vld [vmem:[#allocation7 + $0x380] sm:$0xff] }
 0x336   :  { %3252 = vmatpush1.bf16.msra.mxu1 %v3251_v33  ;;  %v580_v33 = vld [vmem:[#allocation7 + $0x280] sm:$0xff] }
 0x337   :  { %3254 = vmatprep.subr.bf16.mxu1 %v3253_v34  ;;  %v582_v34 = vld [vmem:[#allocation7 + $0x290] sm:$0xff] }
 0x33a   :  { %3256 = vmatpush1.bf16.msra.mxu1 %v3255_v39  ;;  %v586_v39 = vld [vmem:[#allocation7 + $0x2b0] sm:$0xff] }
 0x33b   :  { %3258 = vmatprep.subr.bf16.mxu1 %v3257_v40  ;;  %v589_v40 = vld [vmem:[#allocation7 + $0x2c8] sm:$0xff]  ;;  %v3295_v42 = vpack.c.bf16 %v586_v39, %v584_v38  ;;  %v627_v38 = vld [vmem:[#allocation7 + $0x3f8] sm:$0xff] }
 0x33c   :  { %v3297_v43 = vpack.c.bf16 %v591_v41, %v589_v40  ;;  %v624_v41 = vld [vmem:[#allocation7 + $0x3e0] sm:$0xff] }
 0x33e   :  { %3260 = vmatpush1.bf16.msra.mxu1 %v3259_v45  ;;  %v590_v45 = vld [vmem:[#allocation7 + $0x2d0] sm:$0xff] }
 0x33f   :  { %3262 = vmatprep.subr.bf16.mxu1 %v3261_v46  ;;  %v593_v46 = vld [vmem:[#allocation7 + $0x2e8] sm:$0xff]  ;;  %v3299_v48 = vpack.c.bf16 %v590_v45, %v588_v44  ;;  %v631_v44 = vld [vmem:[#allocation7 + $0x418] sm:$0xff] }
 0x340   :  { %v3301_v49 = vpack.c.bf16 %v595_v47, %v593_v46  ;;  %v628_v47 = vld [vmem:[#allocation7 + $0x400] sm:$0xff] }
 0x342   :  { %3264 = vmatpush1.bf16.msra.mxu1 %v3263_v51  ;;  %v594_v51 = vld [vmem:[#allocation7 + $0x2f0] sm:$0xff] }
 0x343   :  { %3266 = vmatprep.subr.bf16.mxu1 %v3265_v52  ;;  %v597_v52 = vld [vmem:[#allocation7 + $0x308] sm:$0xff]  ;;  %v3303_v54 = vpack.c.bf16 %v594_v51, %v592_v50  ;;  %v635_v50 = vld [vmem:[#allocation7 + $0x438] sm:$0xff] }
 0x344   :  { %v3305_v55 = vpack.c.bf16 %v599_v53, %v597_v52  ;;  %v632_v53 = vld [vmem:[#allocation7 + $0x420] sm:$0xff] }
 0x346   :  { %3268 = vmatpush1.bf16.msra.mxu1 %v3267_v57  ;;  %v598_v57 = vld [vmem:[#allocation7 + $0x310] sm:$0xff] }
 0x347   :  { %3270 = vmatprep.subr.bf16.mxu1 %v3269_v58  ;;  %v601_v58 = vld [vmem:[#allocation7 + $0x328] sm:$0xff]  ;;  %v3307_v60 = vpack.c.bf16 %v598_v57, %v596_v56  ;;  %v639_v56 = vld [vmem:[#allocation7 + $0x458] sm:$0xff] }
 0x348   :  { %v3309_v61 = vpack.c.bf16 %v603_v59, %v601_v58  ;;  %v636_v59 = vld [vmem:[#allocation7 + $0x440] sm:$0xff] }
 0x34a   :  { %3272 = vmatpush1.bf16.msra.mxu1 %v3271_v63  ;;  %v602_v63 = vld [vmem:[#allocation7 + $0x330] sm:$0xff] }
 0x34b   :  { %3274 = vmatprep.subr.bf16.mxu1 %v3273_v5  ;;  %v605_v5 = vld [vmem:[#allocation7 + $0x348] sm:$0xff]  ;;  %v3311_v8 = vpack.c.bf16 %v602_v63, %v600_v62  ;;  %v643_v62 = vld [vmem:[#allocation7 + $0x478] sm:$0xff] }
 0x34c   :  { %v3313_v9 = vpack.c.bf16 %v607_v7, %v605_v5  ;;  %v640_v7 = vld [vmem:[#allocation7 + $0x460] sm:$0xff] }
 0x34d   :  { %769 = vmatmul.mubr.f32.vlgmr.msra.gmra.mrb[4].mxu1 %v4257_v0  ;;  %v578_v0 = vld [vmem:[#allocation7 + $0x270] sm:$0xff] }
 0x34e   :  { %774 = vmatprep.mubr.f32.mxu1 %v4279_v6  ;;  %3276 = vmatpush1.bf16.msra.mxu1 %v3275_v12  ;;  %v583_v6 = vld [vmem:[#allocation7 + $0x298] sm:$0xff]  ;;  %v3287_v31 = vpack.c.bf16 %v578_v0, %v576_v29  ;;  %v606_v12 = vld [vmem:[#allocation7 + $0x350] sm:$0xff] }
 0x34f   :  { %3278 = vmatprep.subr.bf16.mxu1 %v3277_v14  ;;  %v3289_v32 = vpack.c.bf16 %v583_v6, %v581_v30  ;;  %v609_v14 = vld [vmem:[#allocation7 + $0x368] sm:$0xff]  ;;  %v3315_v17 = vpack.c.bf16 %v606_v12, %v604_v10  ;;  %v619_v29 = vld [vmem:[#allocation7 + $0x3b8] sm:$0xff]  ;;  %v616_v6 = vld [vmem:[#allocation7 + $0x3a0] sm:$0xff] }
 0x350   :  { %v3317_v18 = vpack.c.bf16 %v611_v15, %v609_v14  ;;  %v647_v10 = vld [vmem:[#allocation7 + $0x498] sm:$0xff]  ;;  %v644_v15 = vld [vmem:[#allocation7 + $0x480] sm:$0xff] }
 0x351   :  { %775 = vmatmul.mubr.f32.gmra.mrb[6].mxu1 %v4259_v1  ;;  %v3291_v1 = vpack.c.bf16 %v582_v34, %v580_v33  ;;  %v623_v33 = vld [vmem:[#allocation7 + $0x3d8] sm:$0xff] }
 0x352   :  { %3280 = vmatpush1.bf16.msra.mxu1 %v3279_v21  ;;  %845 = vmatprep.mubr.f32.mxu1 %v4301_v20  ;;  %v610_v21 = vld [vmem:[#allocation7 + $0x370] sm:$0xff] }
 0x353   :  { %3282 = vmatprep.subr.bf16.mxu1 %v3281_v22  ;;  %v613_v22 = vld [vmem:[#allocation7 + $0x388] sm:$0xff]  ;;  %v3319_v24 = vpack.c.bf16 %v610_v21, %v608_v19  ;;  %v651_v19 = vld [vmem:[#allocation7 + $0x4b8] sm:$0xff] }
 0x354   :  { %v3321_v25 = vpack.c.bf16 %v615_v23, %v613_v22  ;;  %v648_v23 = vld [vmem:[#allocation7 + $0x4a0] sm:$0xff] }
 0x356   :  { %3284 = vmatpush1.bf16.msra.mxu1 %v3283_v27  ;;  %v614_v27 = vld [vmem:[#allocation7 + $0x390] sm:$0xff] }
 0x357   :  { %3286 = vmatprep.subr.bf16.mxu1 %v3285_v28  ;;  %v617_v28 = vld [vmem:[#allocation7 + $0x3a8] sm:$0xff]  ;;  %v3323_v0 = vpack.c.bf16 %v614_v27, %v612_v26  ;;  %v655_v26 = vld [vmem:[#allocation7 + $0x4d8] sm:$0xff] }
 0x358   :  { %v3325_v30 = vpack.c.bf16 %v619_v29, %v617_v28  ;;  %v652_v29 = vld [vmem:[#allocation7 + $0x4c0] sm:$0xff] }
 0x35a   :  { %3288 = vmatpush1.bf16.msra.mxu1 %v3287_v31  ;;  %v618_v31 = vld [vmem:[#allocation7 + $0x3b0] sm:$0xff] }
 0x35b   :  { %3290 = vmatprep.subr.bf16.mxu1 %v3289_v32  ;;  %v621_v32 = vld [vmem:[#allocation7 + $0x3c8] sm:$0xff]  ;;  %v3327_v34 = vpack.c.bf16 %v618_v31, %v616_v6  ;;  %v659_v6 = vld [vmem:[#allocation7 + $0x4f8] sm:$0xff] }
 0x35c   :  { %v3329_v35 = vpack.c.bf16 %v623_v33, %v621_v32  ;;  %v656_v33 = vld [vmem:[#allocation7 + $0x4e0] sm:$0xff] }
 0x35e   :  { %3292 = vmatpush1.bf16.msra.mxu1 %v3291_v1  ;;  %v622_v1 = vld [vmem:[#allocation7 + $0x3d0] sm:$0xff] }
 0x35f   :  { %3294 = vmatprep.subr.bf16.mxu1 %v3293_v37  ;;  %v625_v37 = vld [vmem:[#allocation7 + $0x3e8] sm:$0xff]  ;;  %v3331_v39 = vpack.c.bf16 %v622_v1, %v620_v36  ;;  %v663_v36 = vld [vmem:[#allocation7 + $0x518] sm:$0xff] }
 0x360   :  { %v3333_v40 = vpack.c.bf16 %v627_v38, %v625_v37  ;;  %v660_v38 = vld [vmem:[#allocation7 + $0x500] sm:$0xff] }
 0x362   :  { %3296 = vmatpush1.bf16.msra.mxu1 %v3295_v42  ;;  %v626_v42 = vld [vmem:[#allocation7 + $0x3f0] sm:$0xff] }
 0x363   :  { %3298 = vmatprep.subr.bf16.mxu1 %v3297_v43  ;;  %v629_v43 = vld [vmem:[#allocation7 + $0x408] sm:$0xff]  ;;  %v3335_v45 = vpack.c.bf16 %v626_v42, %v624_v41  ;;  %v667_v41 = vld [vmem:[#allocation7 + $0x538] sm:$0xff] }
 0x364   :  { %v3337_v46 = vpack.c.bf16 %v631_v44, %v629_v43  ;;  %v664_v44 = vld [vmem:[#allocation7 + $0x520] sm:$0xff] }
 0x366   :  { %3300 = vmatpush1.bf16.msra.mxu1 %v3299_v48  ;;  %v630_v48 = vld [vmem:[#allocation7 + $0x410] sm:$0xff] }
 0x367   :  { %3302 = vmatprep.subr.bf16.mxu1 %v3301_v49  ;;  %v633_v49 = vld [vmem:[#allocation7 + $0x428] sm:$0xff]  ;;  %v3339_v51 = vpack.c.bf16 %v630_v48, %v628_v47  ;;  %v671_v47 = vld [vmem:[#allocation7 + $0x558] sm:$0xff] }
 0x368   :  { %v3341_v52 = vpack.c.bf16 %v635_v50, %v633_v49  ;;  %v668_v50 = vld [vmem:[#allocation7 + $0x540] sm:$0xff] }
 0x36a   :  { %3304 = vmatpush1.bf16.msra.mxu1 %v3303_v54  ;;  %v634_v54 = vld [vmem:[#allocation7 + $0x430] sm:$0xff] }
 0x36b   :  { %3306 = vmatprep.subr.bf16.mxu1 %v3305_v55  ;;  %v637_v55 = vld [vmem:[#allocation7 + $0x448] sm:$0xff]  ;;  %v3343_v57 = vpack.c.bf16 %v634_v54, %v632_v53  ;;  %v675_v53 = vld [vmem:[#allocation7 + $0x578] sm:$0xff] }
 0x36c   :  { %v3345_v58 = vpack.c.bf16 %v639_v56, %v637_v55  ;;  %v672_v56 = vld [vmem:[#allocation7 + $0x560] sm:$0xff] }
 0x36e   :  { %3308 = vmatpush1.bf16.msra.mxu1 %v3307_v60  ;;  %v638_v60 = vld [vmem:[#allocation7 + $0x450] sm:$0xff] }
 0x36f   :  { %3310 = vmatprep.subr.bf16.mxu1 %v3309_v61  ;;  %v641_v61 = vld [vmem:[#allocation7 + $0x468] sm:$0xff]  ;;  %v3347_v63 = vpack.c.bf16 %v638_v60, %v636_v59  ;;  %v679_v59 = vld [vmem:[#allocation7 + $0x598] sm:$0xff] }
 0x370   :  { %v3349_v5 = vpack.c.bf16 %v643_v62, %v641_v61  ;;  %v676_v62 = vld [vmem:[#allocation7 + $0x580] sm:$0xff] }
 0x372   :  { %3312 = vmatpush1.bf16.msra.mxu1 %v3311_v8  ;;  %v642_v8 = vld [vmem:[#allocation7 + $0x470] sm:$0xff] }
 0x373   :  { %3314 = vmatprep.subr.bf16.mxu1 %v3313_v9  ;;  %v645_v9 = vld [vmem:[#allocation7 + $0x488] sm:$0xff]  ;;  %v3351_v12 = vpack.c.bf16 %v642_v8, %v640_v7  ;;  %v683_v7 = vld [vmem:[#allocation7 + $0x5b8] sm:$0xff] }
 0x374   :  { %v3353_v14 = vpack.c.bf16 %v647_v10, %v645_v9  ;;  %v680_v10 = vld [vmem:[#allocation7 + $0x5a0] sm:$0xff] }
 0x376   :  { %3316 = vmatpush1.bf16.msra.mxu1 %v3315_v17  ;;  %v646_v17 = vld [vmem:[#allocation7 + $0x490] sm:$0xff] }
 0x377   :  { %3318 = vmatprep.subr.bf16.mxu1 %v3317_v18  ;;  %v649_v18 = vld [vmem:[#allocation7 + $0x4a8] sm:$0xff]  ;;  %v3355_v21 = vpack.c.bf16 %v646_v17, %v644_v15  ;;  %v687_v15 = vld [vmem:[#allocation7 + $0x5d8] sm:$0xff] }
 0x378   :  { %v3357_v22 = vpack.c.bf16 %v651_v19, %v649_v18  ;;  %v684_v19 = vld [vmem:[#allocation7 + $0x5c0] sm:$0xff] }
 0x37a   :  { %3320 = vmatpush1.bf16.msra.mxu1 %v3319_v24  ;;  %v650_v24 = vld [vmem:[#allocation7 + $0x4b0] sm:$0xff] }
 0x37b   :  { %3322 = vmatprep.subr.bf16.mxu1 %v3321_v25  ;;  %v653_v25 = vld [vmem:[#allocation7 + $0x4c8] sm:$0xff]  ;;  %v3359_v27 = vpack.c.bf16 %v650_v24, %v648_v23 }
 0x37c   :  { %v3361_v28 = vpack.c.bf16 %v655_v26, %v653_v25 }
 0x37e   :  { %3324 = vmatpush1.bf16.msra.mxu1 %v3323_v0  ;;  %v654_v0 = vld [vmem:[#allocation7 + $0x4d0] sm:$0xff] }
 0x37f   :  { %3326 = vmatprep.subr.bf16.mxu1 %v3325_v30  ;;  %v657_v30 = vld [vmem:[#allocation7 + $0x4e8] sm:$0xff]  ;;  %v3363_v31 = vpack.c.bf16 %v654_v0, %v652_v29  ;;  %v691_v29 = vld [vmem:[#allocation7 + $0x5f8] sm:$0xff] }
 0x380   :  { %v3365_v32 = vpack.c.bf16 %v659_v6, %v657_v30  ;;  %v688_v30 = vld [vmem:[#allocation7 + $0x5e0] sm:$0xff]  ;;  %v690_v6 = vld [vmem:[#allocation7 + $0x5f0] sm:$0xff] }
 0x382   :  { %3328 = vmatpush1.bf16.msra.mxu1 %v3327_v34  ;;  %v658_v34 = vld [vmem:[#allocation7 + $0x4f0] sm:$0xff] }
 0x383   :  { %3330 = vmatprep.subr.bf16.mxu1 %v3329_v35  ;;  %v661_v35 = vld [vmem:[#allocation7 + $0x508] sm:$0xff]  ;;  %v3367_v1 = vpack.c.bf16 %v658_v34, %v656_v33  ;;  %v1325_v34 = vld [vmem:[#allocation7 + $0x600] sm:$0xff] }
 0x384   :  { %v3369_v37 = vpack.c.bf16 %v663_v36, %v661_v35  ;;  %v1327_v36 = vld [vmem:[#allocation7 + $0x610] sm:$0xff] }
 0x386   :  { %3332 = vmatpush1.bf16.msra.mxu1 %v3331_v39  ;;  %v662_v39 = vld [vmem:[#allocation7 + $0x510] sm:$0xff] }
 0x387   :  { %3334 = vmatprep.subr.bf16.mxu1 %v3333_v40  ;;  %v665_v40 = vld [vmem:[#allocation7 + $0x528] sm:$0xff]  ;;  %v3371_v42 = vpack.c.bf16 %v662_v39, %v660_v38  ;;  %v3423_v38 = vpack.c.bf16 %v1327_v36, %v1325_v34 }
 0x388   :  { %v3373_v43 = vpack.c.bf16 %v667_v41, %v665_v40  ;;  %v1329_v40 = vld [vmem:[#allocation7 + $0x620] sm:$0xff]  ;;  %v1331_v41 = vld [vmem:[#allocation7 + $0x630] sm:$0xff]  ;;  %v1370_v34 = vld [vmem:[#allocation7 + $0x768] sm:$0xff] }
 0x38a   :  { %3336 = vmatpush1.bf16.msra.mxu1 %v3335_v45  ;;  %v666_v45 = vld [vmem:[#allocation7 + $0x530] sm:$0xff] }
 0x38b   :  { %3338 = vmatprep.subr.bf16.mxu1 %v3337_v46  ;;  %v669_v46 = vld [vmem:[#allocation7 + $0x548] sm:$0xff]  ;;  %v3375_v48 = vpack.c.bf16 %v666_v45, %v664_v44  ;;  %v1333_v44 = vld [vmem:[#allocation7 + $0x640] sm:$0xff]  ;;  %v1335_v45 = vld [vmem:[#allocation7 + $0x650] sm:$0xff] }
 0x38c   :  { %v3377_v49 = vpack.c.bf16 %v671_v47, %v669_v46  ;;  %v1338_v46 = vld [vmem:[#allocation7 + $0x668] sm:$0xff]  ;;  %v1340_v47 = vld [vmem:[#allocation7 + $0x678] sm:$0xff] }
 0x38d   :  { %846 = vmatmul.mubr.f32.vlgmr.msra.gmra.mrb[4].mxu1 %v4290_v13 }
 0x38e   :  { %851 = vmatprep.mubr.f32.mxu1 %v4299_v16  ;;  %3340 = vmatpush1.bf16.msra.mxu1 %v3339_v51  ;;  %v670_v51 = vld [vmem:[#allocation7 + $0x550] sm:$0xff] }
 0x38f   :  { %3342 = vmatprep.subr.bf16.mxu1 %v3341_v52  ;;  %v673_v52 = vld [vmem:[#allocation7 + $0x568] sm:$0xff]  ;;  %v3379_v54 = vpack.c.bf16 %v670_v51, %v668_v50  ;;  %v1337_v50 = vld [vmem:[#allocation7 + $0x660] sm:$0xff]  ;;  %v1339_v51 = vld [vmem:[#allocation7 + $0x670] sm:$0xff] }
 0x390   :  { %v3381_v55 = vpack.c.bf16 %v675_v53, %v673_v52  ;;  %v1342_v52 = vld [vmem:[#allocation7 + $0x688] sm:$0xff]  ;;  %v1344_v53 = vld [vmem:[#allocation7 + $0x698] sm:$0xff] }
 0x391   :  { %852 = vmatmul.mubr.f32.gmra.mrb[6].mxu1 %v4287_v11 }
 0x392   :  { %3344 = vmatpush1.bf16.msra.mxu1 %v3343_v57  ;;  %v674_v57 = vld [vmem:[#allocation7 + $0x570] sm:$0xff] }
 0x393   :  { %3346 = vmatprep.subr.bf16.mxu1 %v3345_v58  ;;  %v677_v58 = vld [vmem:[#allocation7 + $0x588] sm:$0xff]  ;;  %v3383_v60 = vpack.c.bf16 %v674_v57, %v672_v56  ;;  %v1341_v56 = vld [vmem:[#allocation7 + $0x680] sm:$0xff]  ;;  %v1343_v57 = vld [vmem:[#allocation7 + $0x690] sm:$0xff] }
 0x394   :  { %v3385_v61 = vpack.c.bf16 %v679_v59, %v677_v58  ;;  %v1346_v58 = vld [vmem:[#allocation7 + $0x6a8] sm:$0xff]  ;;  %v1348_v59 = vld [vmem:[#allocation7 + $0x6b8] sm:$0xff] }
 0x396   :  { %3348 = vmatpush1.bf16.msra.mxu1 %v3347_v63  ;;  %v678_v63 = vld [vmem:[#allocation7 + $0x590] sm:$0xff] }
 0x397   :  { %3350 = vmatprep.subr.bf16.mxu1 %v3349_v5  ;;  %v681_v5 = vld [vmem:[#allocation7 + $0x5a8] sm:$0xff]  ;;  %v3387_v8 = vpack.c.bf16 %v678_v63, %v676_v62  ;;  %v1345_v62 = vld [vmem:[#allocation7 + $0x6a0] sm:$0xff]  ;;  %v1347_v63 = vld [vmem:[#allocation7 + $0x6b0] sm:$0xff] }
 0x398   :  { %v3389_v9 = vpack.c.bf16 %v683_v7, %v681_v5  ;;  %v1350_v5 = vld [vmem:[#allocation7 + $0x6c8] sm:$0xff]  ;;  %v1352_v7 = vld [vmem:[#allocation7 + $0x6d8] sm:$0xff] }
 0x39a   :  { %3352 = vmatpush1.bf16.msra.mxu1 %v3351_v12  ;;  %v682_v12 = vld [vmem:[#allocation7 + $0x5b0] sm:$0xff] }
 0x39b   :  { %3354 = vmatprep.subr.bf16.mxu1 %v3353_v14  ;;  %v685_v14 = vld [vmem:[#allocation7 + $0x5c8] sm:$0xff]  ;;  %v3391_v17 = vpack.c.bf16 %v682_v12, %v680_v10  ;;  %v1349_v10 = vld [vmem:[#allocation7 + $0x6c0] sm:$0xff]  ;;  %v1351_v12 = vld [vmem:[#allocation7 + $0x6d0] sm:$0xff] }
 0x39c   :  { %v3393_v18 = vpack.c.bf16 %v687_v15, %v685_v14  ;;  %v1354_v14 = vld [vmem:[#allocation7 + $0x6e8] sm:$0xff]  ;;  %v1356_v15 = vld [vmem:[#allocation7 + $0x6f8] sm:$0xff] }
 0x39e   :  { %3356 = vmatpush1.bf16.msra.mxu1 %v3355_v21  ;;  %v686_v21 = vld [vmem:[#allocation7 + $0x5d0] sm:$0xff] }
 0x39f   :  { %3358 = vmatprep.subr.bf16.mxu1 %v3357_v22  ;;  %v3395_v22 = vpack.c.bf16 %v686_v21, %v684_v19  ;;  %v1353_v19 = vld [vmem:[#allocation7 + $0x6e0] sm:$0xff]  ;;  %v1355_v21 = vld [vmem:[#allocation7 + $0x6f0] sm:$0xff] }
 0x3a2   :  { %3360 = vmatpush1.bf16.msra.mxu1 %v3359_v27 }
 0x3a3   :  { %3362 = vmatprep.subr.bf16.mxu1 %v3361_v28  ;;  %v689_v28 = vld [vmem:[#allocation7 + $0x5e8] sm:$0xff] }
 0x3a4   :  { %v3397_v0 = vpack.c.bf16 %v691_v29, %v689_v28  ;;  %v1362_v28 = vld [vmem:[#allocation7 + $0x728] sm:$0xff]  ;;  %v1364_v29 = vld [vmem:[#allocation7 + $0x738] sm:$0xff] }
 0x3a6   :  { %3364 = vmatpush1.bf16.msra.mxu1 %v3363_v31  ;;  %v3399_v31 = vpack.c.bf16 %v690_v6, %v688_v30  ;;  %v3457_v30 = vpack.c.bf16 %v1364_v29, %v1362_v28  ;;  %v1361_v6 = vld [vmem:[#allocation7 + $0x720] sm:$0xff]  ;;  %v1387_v28 = vld [vmem:[#allocation7 + $0x7f0] sm:$0xff] }
 0x3a7   :  { %3366 = vmatprep.subr.bf16.mxu1 %v3365_v32 }
 0x3aa   :  { %3368 = vmatpush1.bf16.msra.mxu1 %v3367_v1  ;;  %v1330_v1 = vld [vmem:[#allocation7 + $0x628] sm:$0xff] }
 0x3ab   :  { %3370 = vmatprep.subr.bf16.mxu1 %v3369_v37  ;;  %v1332_v37 = vld [vmem:[#allocation7 + $0x638] sm:$0xff] }
 0x3ac   :  { %v3425_v39 = vpack.c.bf16 %v1332_v37, %v1330_v1  ;;  %v1369_v37 = vld [vmem:[#allocation7 + $0x760] sm:$0xff] }
 0x3ae   :  { %3372 = vmatpush1.bf16.msra.mxu1 %v3371_v42  ;;  %v1334_v42 = vld [vmem:[#allocation7 + $0x648] sm:$0xff] }
 0x3af   :  { %3374 = vmatprep.subr.bf16.mxu1 %v3373_v43 }
 0x3b2   :  { %3376 = vmatpush1.bf16.msra.mxu1 %v3375_v48  ;;  %v3431_v48 = vpack.c.bf16 %v1335_v45, %v1333_v44  ;;  %v1380_v44 = vld [vmem:[#allocation7 + $0x7b8] sm:$0xff] }
 0x3b3   :  { %3378 = vmatprep.subr.bf16.mxu1 %v3377_v49  ;;  %v3433_v49 = vpack.c.bf16 %v1340_v47, %v1338_v46  ;;  %v1377_v47 = vld [vmem:[#allocation7 + $0x7a0] sm:$0xff] }
 0x3b6   :  { %3380 = vmatpush1.bf16.msra.mxu1 %v3379_v54  ;;  %v3435_v54 = vpack.c.bf16 %v1339_v51, %v1337_v50  ;;  %v1384_v50 = vld [vmem:[#allocation7 + $0x7d8] sm:$0xff] }
 0x3b7   :  { %3382 = vmatprep.subr.bf16.mxu1 %v3381_v55  ;;  %v3437_v55 = vpack.c.bf16 %v1344_v53, %v1342_v52  ;;  %v1381_v53 = vld [vmem:[#allocation7 + $0x7c0] sm:$0xff] }
 0x3ba   :  { %3384 = vmatpush1.bf16.msra.mxu1 %v3383_v60  ;;  %v3439_v60 = vpack.c.bf16 %v1343_v57, %v1341_v56  ;;  %v694_v56 = vlaneseq }
 0x3bb   :  { %3386 = vmatprep.subr.bf16.mxu1 %v3385_v61  ;;  %v3441_v61 = vpack.c.bf16 %v1348_v59, %v1346_v58  ;;  %v692_v59 = vld [vmem:[#allocation8] sm:$0x3] }
 0x3bc   :  { %v695_v57 = vshrl.u32 %v694_v56, 7  ;;  %v1398_v56 = vld [vmem:[#allocation7 + $0x848] sm:$0xff] }
 0x3be   :  { %3388 = vmatpush1.bf16.msra.mxu1 %v3387_v8  ;;  %v3443_v8 = vpack.c.bf16 %v1347_v63, %v1345_v62  ;;  %v4322_v58 = vsub.s32 0, %v695_v57 }
 0x3bf   :  { %3390 = vmatprep.subr.bf16.mxu1 %v3389_v9  ;;  %v3445_v9 = vpack.c.bf16 %v1352_v7, %v1350_v5 }
 0x3c2   :  { %3392 = vmatpush1.bf16.msra.mxu1 %v3391_v17  ;;  %v3447_v17 = vpack.c.bf16 %v1351_v12, %v1349_v10 }
 0x3c3   :  { %3394 = vmatprep.subr.bf16.mxu1 %v3393_v18  ;;  %v3449_v18 = vpack.c.bf16 %v1356_v15, %v1354_v14 }
 0x3c6   :  { %3396 = vmatpush1.bf16.msra.mxu1 %v3395_v22  ;;  %v1358_v22 = vld [vmem:[#allocation7 + $0x708] sm:$0xff] }
 0x3c7   :  { %3398 = vmatprep.subr.bf16.mxu1 %v3397_v0 }
 0x3ca   :  { %3400 = vmatpush1.bf16.msra.mxu1 %v3399_v31  ;;  %v1363_v31 = vld [vmem:[#allocation7 + $0x730] sm:$0xff] }
 0x3e0   :  { %v3111_v23 = vpop.f32.mrb[2].mxu1 }
 0x3e1   :  { %v422_v24 = vsub.f32 %v3111_v23, %v4287_v11  ;;  %v412_v25 = vpop.f32.mrb[3].mxu1  ;;  %v1360_v23 = vld [vmem:[#allocation7 + $0x718] sm:$0xff] }
 0x3e2   :  { %v421_v26 = vsub.f32 %v412_v25, %v4290_v13  ;;  %v3453_v25 = vpack.c.bf16 %v1360_v23, %v1358_v22  ;;  %v4328_v22 = vld [vmem:[#allocation2 + $0x8] sm:$0xff]  ;;  %v4332_v23 = vld [vmem:[#allocation2] sm:$0xff] }
 0x3e4   :  { %v3205_v27 = vpack.c.bf16 %v422_v24, %v421_v26 }
 0x3e6   :  { %3206 = vmatprep.subr.bf16.mxu0 %v3205_v27 }
 0x3e7   :  { %3208 = vmatpush3.bf16.msra.mxu0 %v3205_v27  ;;  %v1359_v27 = vld [vmem:[#allocation7 + $0x710] sm:$0xff] }
 0x3ea   :  { %3117 = vmatmul.mubr.msk.f32.vlgmr.msra.gmra.mrb[4].mxu0 %vm108_vm0, %v4273_v4  ;;  %v1326_v4 = vld [vmem:[#allocation7 + $0x608] sm:$0xff] }
 0x3eb   :  { %3123 = vmatprep.mubr.msk.f32.mxu0 %vm108_vm0, %v4261_v2  ;;  %v1328_v2 = vld [vmem:[#allocation7 + $0x618] sm:$0xff] }
 0x3ec   :  { %v3421_v35 = vpack.c.bf16 %v1328_v2, %v1326_v4  ;;  %v1365_v4 = vld [vmem:[#allocation7 + $0x740] sm:$0xff]  ;;  %v1367_v2 = vld [vmem:[#allocation7 + $0x750] sm:$0xff] }
 0x3ed   :  { %v3463_v36 = vpack.c.bf16 %v1367_v2, %v1365_v4 }
 0x3ee   :  { %3422 = vmatprep.subr.bf16.mxu1 %v3421_v35  ;;  %v1372_v35 = vld [vmem:[#allocation7 + $0x778] sm:$0xff] }
 0x3ef   :  { %v3465_v1 = vpack.c.bf16 %v1372_v35, %v1370_v34 }
 0x4bd   :  { %v3118_v11 = vpop.f32.mrb[4].mxu0 }
 0x4be   :  { %v489_v32 = vpop.f32.mrb[5].mxu0  ;;  %v499_v33 = vsub.f32 %v3118_v11, %v4299_v16  ;;  %v3427_v16 = vpack.c.bf16 %v1331_v41, %v1329_v40  ;;  %v1366_v11 = vld [vmem:[#allocation7 + $0x748] sm:$0xff]  ;;  %v1376_v40 = vld [vmem:[#allocation7 + $0x798] sm:$0xff] }
 0x4bf   :  { %v498_v13 = vsub.f32 %v489_v32, %v4301_v20  ;;  %v1336_v20 = vld [vmem:[#allocation7 + $0x658] sm:$0xff] }
 0x4c0   :  { %v3429_v43 = vpack.c.bf16 %v1336_v20, %v1334_v42  ;;  %v1368_v32 = vld [vmem:[#allocation7 + $0x758] sm:$0xff]  ;;  %v1373_v20 = vld [vmem:[#allocation7 + $0x780] sm:$0xff] }
 0x4c1   :  { %922 = vmatprep.mubr.f32.mxu1 %v498_v13  ;;  %v3459_v13 = vpack.c.bf16 %v1363_v31, %v1361_v6 }
 0x4c2   :  { %923 = vmatmul.mubr.f32.vlgmr.msra.gmra.mrb[4].mxu1 %v421_v26  ;;  %v1357_v26 = vld [vmem:[#allocation7 + $0x700] sm:$0xff] }
 0x4c3   :  { %928 = vmatprep.mubr.f32.mxu1 %v499_v33  ;;  %3424 = vmatpush1.bf16.msra.mxu1 %v3423_v38  ;;  %v3455_v0 = vpack.c.bf16 %v1359_v27, %v1357_v26  ;;  %v3461_v33 = vpack.c.bf16 %v1368_v32, %v1366_v11  ;;  %v1371_v38 = vld [vmem:[#allocation7 + $0x770] sm:$0xff]  ;;  %v1385_v27 = vld [vmem:[#allocation7 + $0x7e0] sm:$0xff] }
 0x4c4   :  { %3426 = vmatprep.subr.bf16.mxu1 %v3425_v39  ;;  %v1374_v39 = vld [vmem:[#allocation7 + $0x788] sm:$0xff]  ;;  %v3467_v41 = vpack.c.bf16 %v1371_v38, %v1369_v37  ;;  %v3483_v29 = vpack.c.bf16 %v1387_v28, %v1385_v27  ;;  %v1409_v28 = vld [vmem:[#allocation7 + $0x8a0] sm:$0xff] }
 0x4c5   :  { %v3469_v42 = vpack.c.bf16 %v1376_v40, %v1374_v39 }
 0x4c6   :  { %929 = vmatmul.mubr.f32.gmra.mrb[6].mxu1 %v422_v24  ;;  %v3451_v24 = vpack.c.bf16 %v1355_v21, %v1353_v19 }
 0x4c7   :  { %3428 = vmatpush1.bf16.msra.mxu1 %v3427_v16  ;;  %v1375_v16 = vld [vmem:[#allocation7 + $0x790] sm:$0xff] }
 0x4c8   :  { %3430 = vmatprep.subr.bf16.mxu1 %v3429_v43  ;;  %v1378_v43 = vld [vmem:[#allocation7 + $0x7a8] sm:$0xff]  ;;  %v3471_v45 = vpack.c.bf16 %v1375_v16, %v1373_v20 }
 0x4c9   :  { %v3473_v46 = vpack.c.bf16 %v1380_v44, %v1378_v43  ;;  %v1390_v43 = vld [vmem:[#allocation7 + $0x808] sm:$0xff]  ;;  %v1392_v44 = vld [vmem:[#allocation7 + $0x818] sm:$0xff] }
 0x4cb   :  { %3432 = vmatpush1.bf16.msra.mxu1 %v3431_v48  ;;  %v1379_v48 = vld [vmem:[#allocation7 + $0x7b0] sm:$0xff] }
 0x4cc   :  { %3434 = vmatprep.subr.bf16.mxu1 %v3433_v49  ;;  %v1382_v49 = vld [vmem:[#allocation7 + $0x7c8] sm:$0xff]  ;;  %v3475_v51 = vpack.c.bf16 %v1379_v48, %v1377_v47  ;;  %v3485_v47 = vpack.c.bf16 %v1392_v44, %v1390_v43  ;;  %v1389_v48 = vld [vmem:[#allocation7 + $0x800] sm:$0xff]  ;;  %v1424_v43 = vld [vmem:[#allocation7 + $0x918] sm:$0xff] }
 0x4cd   :  { %v3477_v52 = vpack.c.bf16 %v1384_v50, %v1382_v49  ;;  %v1391_v49 = vld [vmem:[#allocation7 + $0x810] sm:$0xff]  ;;  %v1394_v50 = vld [vmem:[#allocation7 + $0x828] sm:$0xff] }
 0x4cf   :  { %3436 = vmatpush1.bf16.msra.mxu1 %v3435_v54  ;;  %v1383_v54 = vld [vmem:[#allocation7 + $0x7d0] sm:$0xff] }
 0x4d0   :  { %3438 = vmatprep.subr.bf16.mxu1 %v3437_v55  ;;  %v3479_v55 = vpack.c.bf16 %v1383_v54, %v1381_v53  ;;  %v1393_v54 = vld [vmem:[#allocation7 + $0x820] sm:$0xff] }
 0x4d3   :  { %3440 = vmatpush1.bf16.msra.mxu1 %v3439_v60  ;;  %v4324_v60 = vsub.s32 1, %v695_v57  ;;  %v1400_v57 = vld [vmem:[#allocation7 + $0x858] sm:$0xff] }
 0x4d4   :  { %3442 = vmatprep.subr.bf16.mxu1 %v3441_v61  ;;  %v697_v61 = vrot.slane %v692_v59, %v4322_v58 }
 0x4d5   :  { %v701_v62 = vrot.slane %v692_v59, %v4324_v60 }
 0x4d7   :  { %3444 = vmatpush1.bf16.msra.mxu1 %v3443_v8 }
 0x4d8   :  { %3446 = vmatprep.subr.bf16.mxu1 %v3445_v9 }
 0x4db   :  { %3448 = vmatpush1.bf16.msra.mxu1 %v3447_v17 }
 0x4dc   :  { %3450 = vmatprep.subr.bf16.mxu1 %v3449_v18 }
 0x4df   :  { %3452 = vmatpush1.bf16.msra.mxu1 %v3451_v24  ;;  %v1386_v24 = vld [vmem:[#allocation7 + $0x7e8] sm:$0xff] }
 0x4e0   :  { %3454 = vmatprep.subr.bf16.mxu1 %v3453_v25  ;;  %v1388_v25 = vld [vmem:[#allocation7 + $0x7f8] sm:$0xff] }
 0x4e1   :  { %v3481_v26 = vpack.c.bf16 %v1388_v25, %v1386_v24  ;;  %v1410_v24 = vld [vmem:[#allocation7 + $0x8a8] sm:$0xff]  ;;  %v1412_v25 = vld [vmem:[#allocation7 + $0x8b8] sm:$0xff] }
 0x4e2   :  { %v3505_v27 = vpack.c.bf16 %v1412_v25, %v1410_v24  ;;  %v1444_v24 = vld [vmem:[#allocation7 + $0x9b8] sm:$0xff] }
 0x4e3   :  { %3456 = vmatpush1.bf16.msra.mxu1 %v3455_v0 }
 0x4e4   :  { %3458 = vmatprep.subr.bf16.mxu1 %v3457_v30 }
 0x4e7   :  { %3460 = vmatpush1.bf16.msra.mxu1 %v3459_v13 }
 0x4e8   :  { %3462 = vmatprep.subr.bf16.mxu1 %v3461_v33 }
 0x4eb   :  { %3464 = vmatpush1.bf16.msra.mxu1 %v3463_v36 }
 0x4ec   :  { %3466 = vmatprep.subr.bf16.mxu1 %v3465_v1 }
 0x4ef   :  { %3468 = vmatpush1.bf16.msra.mxu1 %v3467_v41 }
 0x4f0   :  { %3470 = vmatprep.subr.bf16.mxu1 %v3469_v42 }
 0x4f3   :  { %3472 = vmatpush1.bf16.msra.mxu1 %v3471_v45 }
 0x4f4   :  { %3474 = vmatprep.subr.bf16.mxu1 %v3473_v46 }
 0x4f7   :  { %3476 = vmatpush1.bf16.msra.mxu1 %v3475_v51  ;;  %v1396_v51 = vld [vmem:[#allocation7 + $0x838] sm:$0xff] }
 0x4f8   :  { %3478 = vmatprep.subr.bf16.mxu1 %v3477_v52  ;;  %v3487_v52 = vpack.c.bf16 %v1391_v49, %v1389_v48  ;;  %v3489_v53 = vpack.c.bf16 %v1396_v51, %v1394_v50  ;;  %v1423_v48 = vld [vmem:[#allocation7 + $0x910] sm:$0xff]  ;;  %v1426_v49 = vld [vmem:[#allocation7 + $0x928] sm:$0xff]  ;;  %v1428_v50 = vld [vmem:[#allocation7 + $0x938] sm:$0xff] }
 0x4fb   :  { %3480 = vmatpush1.bf16.msra.mxu1 %v3479_v55  ;;  %v1395_v55 = vld [vmem:[#allocation7 + $0x830] sm:$0xff] }
 0x4fc   :  { %3482 = vmatprep.subr.bf16.mxu1 %v3481_v26  ;;  %v3491_v59 = vpack.c.bf16 %v1395_v55, %v1393_v54  ;;  %v1427_v54 = vld [vmem:[#allocation7 + $0x930] sm:$0xff]  ;;  %v1430_v55 = vld [vmem:[#allocation7 + $0x948] sm:$0xff] }
 0x4ff   :  { %3484 = vmatpush1.bf16.msra.mxu1 %v3483_v29  ;;  %v1411_v29 = vld [vmem:[#allocation7 + $0x8b0] sm:$0xff] }
 0x595   :  { %v924_v63 = vpop.f32.mrb[4].mxu1 }
 0x596   :  { %v3893_v5 = vadd.f32 %v924_v63, %v697_v61  ;;  %v926_v7 = vpop.f32.mrb[5].mxu1  ;;  %v1399_v63 = vld [vmem:[#allocation7 + $0x850] sm:$0xff] }
 0x597   :  { %v3894_v8 = vadd.f32 %v926_v7, %v701_v62  ;;  %v1404_v7 = vld [vmem:[#allocation7 + $0x878] sm:$0xff] }
 0x598   :  { %v935_v9 = vmax.f32 %v3893_v5, 0.0  ;;  %v1402_v5 = vld [vmem:[#allocation7 + $0x868] sm:$0xff] }
 0x599   :  { %v930_v10 = vpop.f32.mrb[6].mxu1 }
 0x59a   :  { %v937_v12 = vadd.f32 %v3894_v8, %v935_v9  ;;  %v3895_v14 = vadd.f32 %v930_v10, %v697_v61  ;;  %v932_v15 = vpop.f32.mrb[7].mxu1  ;;  %v3493_v61 = vpack.c.bf16 %v1400_v57, %v1398_v56  ;;  %v3497_v9 = vpack.c.bf16 %v1404_v7, %v1402_v5  ;;  %v1401_v10 = vld [vmem:[#allocation7 + $0x860] sm:$0xff]  ;;  %v1432_v56 = vld [vmem:[#allocation7 + $0x958] sm:$0xff] }
 0x59b   :  { %v3896_v17 = vadd.f32 %v932_v15, %v701_v62  ;;  %v1397_v62 = vld [vmem:[#allocation7 + $0x840] sm:$0xff]  ;;  %v1408_v15 = vld [vmem:[#allocation7 + $0x898] sm:$0xff] }
 0x59c   :  { %v936_v18 = vmax.f32 %v3895_v14, 0.0  ;;  %v3495_v8 = vpack.c.bf16 %v1399_v63, %v1397_v62  ;;  %v1406_v14 = vld [vmem:[#allocation7 + $0x888] sm:$0xff]  ;;  %v1431_v62 = vld [vmem:[#allocation7 + $0x950] sm:$0xff]  ;;  %v1436_v5 = vld [vmem:[#allocation7 + $0x978] sm:$0xff] }
 0x59d   :  { %v1434_v63 = vld [vmem:[#allocation7 + $0x968] sm:$0xff] }
 0x59e   :  { %v938_v19 = vadd.f32 %v3896_v17, %v936_v18  ;;  %v3501_v18 = vpack.c.bf16 %v1408_v15, %v1406_v14  ;;  %v1440_v14 = vld [vmem:[#allocation7 + $0x998] sm:$0xff] }
 0x5a0   :  { %v3401_v21 = vpack.c.bf16 %v938_v19, %v937_v12 }
 0x5a2   :  { %3402 = vmatprep.subr.bf16.mxu0 %v3401_v21 }
 0x5a3   :  { %3404 = vmatpush3.bf16.msra.mxu0 %v3401_v21  ;;  %v1407_v21 = vld [vmem:[#allocation7 + $0x890] sm:$0xff] }
 0x5a6   :  { %3124 = vmatmul.mubr.msk.f32.vlgmr.msra.gmra.mrb[6].mxu0 %vm108_vm0, %v4328_v22 }
 0x5a7   :  { %3130 = vmatprep.mubr.msk.f32.mxu0 %vm108_vm0, %v4332_v23 }
 0x679   :  { %v3125_v0 = vpop.f32.mrb[6].mxu0 }
 0x67a   :  { %v1015_v30 = vmul.f32 0.5, %v3125_v0  ;;  %v1005_v6 = vpop.f32.mrb[7].mxu0  ;;  %v1414_v0 = vld [vmem:[#allocation7 + $0x8c8] sm:$0xff] }
 0x67b   :  { %v1014_v31 = vmul.f32 0.5, %v1005_v6  ;;  %v3507_v6 = vpack.c.bf16 %v1411_v29, %v1409_v28  ;;  %v1443_v28 = vld [vmem:[#allocation7 + $0x9b0] sm:$0xff]  ;;  %v1446_v29 = vld [vmem:[#allocation7 + $0x9c8] sm:$0xff] }
 0x67d   :  { %1594 = vmatprep.mubr.f32.mxu1 %v1014_v31  ;;  %v3405_v11 = vpack.c.bf16 %v1015_v30, %v1014_v31 }
 0x67e   :  { %1595 = vmatmul.mubr.f32.vlgmr.msra.gmra.mrb[8].mxu1 %v937_v12 }
 0x67f   :  { %3406 = vmatprep.subr.bf16.mxu0 %v3405_v11  ;;  %1600 = vmatprep.mubr.f32.mxu1 %v1015_v30 }
 0x680   :  { %3408 = vmatpush3.bf16.msra.mxu0 %v3405_v11  ;;  %v1413_v11 = vld [vmem:[#allocation7 + $0x8c0] sm:$0xff] }
 0x682   :  { %1601 = vmatmul.mubr.f32.gmra.mrb[10].mxu1 %v938_v19 }
 0x683   :  { %3131 = vmatmul.mubr.msk.f32.vlgmr.msra.gmra.mrb[8].mxu0 %vm108_vm0, %v4328_v22  ;;  %3158 = vmatprep.mubr.msk.f32.mxu1 %vm108_vm0, %v4332_v23 }
 0x684   :  { %3137 = vmatprep.mubr.msk.f32.mxu0 %vm108_vm0, %v4332_v23 }
 0x751   :  { %v4342_v32 = vpop.f32.mrb[8].mxu1 }
 0x752   :  { %v4344_v13 = vpop.f32.mrb[9].mxu1 }
 0x755   :  { %v4346_v33 = vpop.f32.mrb[10].mxu1 }
 0x756   :  { %v3132_v4 = vpop.f32.mrb[8].mxu0  ;;  %v4348_v2 = vpop.f32.mrb[11].mxu1 }
 0x757   :  { %v4350_v34 = vsub.f32 %v3132_v4, %v938_v19  ;;  %v1082_v35 = vpop.f32.mrb[9].mxu0  ;;  %v1405_v19 = vld [vmem:[#allocation7 + $0x880] sm:$0xff]  ;;  %v1415_v4 = vld [vmem:[#allocation7 + $0x8d0] sm:$0xff] }
 0x758   :  { %v4352_v36 = vsub.f32 %v1082_v35, %v937_v12  ;;  %v1403_v12 = vld [vmem:[#allocation7 + $0x870] sm:$0xff]  ;;  %v3503_v26 = vpack.c.bf16 %v1407_v21, %v1405_v19  ;;  %v1418_v35 = vld [vmem:[#allocation7 + $0x8e8] sm:$0xff] }
 0x759   :  { %v3499_v17 = vpack.c.bf16 %v1403_v12, %v1401_v10  ;;  %v1435_v10 = vld [vmem:[#allocation7 + $0x970] sm:$0xff]  ;;  %v1438_v12 = vld [vmem:[#allocation7 + $0x988] sm:$0xff] }
 0x75a   :  { %v3409_v1 = vpack.c.bf16 %v4350_v34, %v4352_v36  ;;  %v1439_v19 = vld [vmem:[#allocation7 + $0x990] sm:$0xff]  ;;  %v1442_v21 = vld [vmem:[#allocation7 + $0x9a8] sm:$0xff] }
 0x75c   :  { %3410 = vmatprep.subr.bf16.mxu0 %v3409_v1 }
 0x75d   :  { %3412 = vmatpush3.bf16.msra.mxu0 %v3409_v1  ;;  %v1420_v1 = vld [vmem:[#allocation7 + $0x8f8] sm:$0xff] }
 0x760   :  { %3138 = vmatmul.mubr.msk.f32.vlgmr.msra.gmra.mrb[10].mxu0 %vm108_vm0, %v4328_v22 }
 0x761   :  { %3144 = vmatprep.mubr.msk.f32.mxu0 %vm108_vm0, %v4332_v23 }
 0x833   :  { %v3139_v37 = vpop.f32.mrb[10].mxu0 }
 0x834   :  { %v4360_v38 = vsub.f32 %v3139_v37, %v1015_v30  ;;  %v1159_v39 = vpop.f32.mrb[11].mxu0  ;;  %v1416_v30 = vld [vmem:[#allocation7 + $0x8d8] sm:$0xff]  ;;  %v3511_v37 = vpack.c.bf16 %v1415_v4, %v1413_v11  ;;  %v1447_v11 = vld [vmem:[#allocation7 + $0x9d0] sm:$0xff]  ;;  %v1450_v4 = vld [vmem:[#allocation7 + $0x9e8] sm:$0xff] }
 0x835   :  { %v4362_v40 = vsub.f32 %v1159_v39, %v1014_v31  ;;  %v3509_v31 = vpack.c.bf16 %v1416_v30, %v1414_v0  ;;  %v3513_v39 = vpack.c.bf16 %v1420_v1, %v1418_v35  ;;  %v1448_v0 = vld [vmem:[#allocation7 + $0x9d8] sm:$0xff] }
 0x836   :  { %v1452_v35 = vld [vmem:[#allocation7 + $0x9f8] sm:$0xff] }
 0x837   :  { %v3413_v41 = vpack.c.bf16 %v4360_v38, %v4362_v40 }
 0x839   :  { %3414 = vmatprep.subr.bf16.mxu0 %v3413_v41 }
 0x83a   :  { %3416 = vmatpush3.bf16.msra.mxu0 %v3413_v41  ;;  %v1417_v41 = vld [vmem:[#allocation7 + $0x8e0] sm:$0xff] }
 0x83d   :  { %3145 = vmatmul.mubr.msk.f32.vlgmr.msra.gmra.mrb[12].mxu0 %vm108_vm0, %v4328_v22 }
 0x83e   :  { %3151 = vmatprep.mubr.msk.f32.mxu0 %vm108_vm0, %v4332_v23 }
 0x910   :  { %v3146_v42 = vpop.f32.mrb[12].mxu0 }
 0x911   :  { %v4371_v20 = vsub.f32 %v3146_v42, %v4350_v34  ;;  %v1236_v16 = vpop.f32.mrb[13].mxu0  ;;  %v1419_v42 = vld [vmem:[#allocation7 + $0x8f0] sm:$0xff] }
 0x912   :  { %v4374_v45 = vsub.f32 %v1236_v16, %v4352_v36  ;;  %v1422_v16 = vld [vmem:[#allocation7 + $0x908] sm:$0xff]  ;;  %v3515_v44 = vpack.c.bf16 %v1419_v42, %v1417_v41  ;;  %v1451_v41 = vld [vmem:[#allocation7 + $0x9f0] sm:$0xff] }
 0x913   :  { %v1454_v42 = vld [vmem:[#allocation7 + $0xa08] sm:$0xff] }
 0x914   :  { %v3417_v46 = vpack.c.bf16 %v4371_v20, %v4374_v45 }
 0x916   :  { %3418 = vmatprep.subr.bf16.mxu0 %v3417_v46 }
 0x917   :  { %3420 = vmatpush3.bf16.msra.mxu0 %v3417_v46  ;;  %v3517_v46 = vpack.c.bf16 %v1424_v43, %v1422_v16  ;;  %v1456_v16 = vld [vmem:[#allocation7 + $0xa18] sm:$0xff] }
 0x918   :  { %3486 = vmatprep.subr.bf16.mxu0 %v3485_v47  ;;  %v1421_v47 = vld [vmem:[#allocation7 + $0x900] sm:$0xff] }
 0x919   :  { %v3519_v51 = vpack.c.bf16 %v1423_v48, %v1421_v47  ;;  %v1455_v47 = vld [vmem:[#allocation7 + $0xa10] sm:$0xff]  ;;  %v1458_v48 = vld [vmem:[#allocation7 + $0xa28] sm:$0xff] }
 0x91a   :  { %3152 = vmatmul.mubr.msk.f32.vlgmr.msra.gmra.mrb[14].mxu0 %vm108_vm0, %v4328_v22 }
 0x91b   :  { %3488 = vmatpush1.bf16.msra.mxu0 %v3487_v52  ;;  %1671 = vmatprep.mubr.f32.mxu0 %v4362_v40  ;;  %v3521_v52 = vpack.c.bf16 %v1428_v50, %v1426_v49  ;;  %v1460_v49 = vld [vmem:[#allocation7 + $0xa38] sm:$0xff] }
 0x91c   :  { %3490 = vmatprep.subr.bf16.mxu0 %v3489_v53  ;;  %v1425_v53 = vld [vmem:[#allocation7 + $0x920] sm:$0xff] }
 0x91d   :  { %v3523_v57 = vpack.c.bf16 %v1427_v54, %v1425_v53  ;;  %v1459_v53 = vld [vmem:[#allocation7 + $0xa30] sm:$0xff]  ;;  %v1462_v54 = vld [vmem:[#allocation7 + $0xa48] sm:$0xff] }
 0x91f   :  { %3492 = vmatpush1.bf16.msra.mxu0 %v3491_v59  ;;  %v3525_v59 = vpack.c.bf16 %v1432_v56, %v1430_v55  ;;  %v1464_v55 = vld [vmem:[#allocation7 + $0xa58] sm:$0xff] }
 0x920   :  { %3494 = vmatprep.subr.bf16.mxu0 %v3493_v61  ;;  %v1429_v61 = vld [vmem:[#allocation7 + $0x940] sm:$0xff] }
 0x921   :  { %v3527_v7 = vpack.c.bf16 %v1431_v62, %v1429_v61  ;;  %v1463_v61 = vld [vmem:[#allocation7 + $0xa50] sm:$0xff]  ;;  %v1466_v62 = vld [vmem:[#allocation7 + $0xa68] sm:$0xff] }
 0x923   :  { %3496 = vmatpush1.bf16.msra.mxu0 %v3495_v8  ;;  %v3529_v8 = vpack.c.bf16 %v1436_v5, %v1434_v63  ;;  %v1468_v63 = vld [vmem:[#allocation7 + $0xa78] sm:$0xff] }
 0x924   :  { %3498 = vmatprep.subr.bf16.mxu0 %v3497_v9  ;;  %v1433_v9 = vld [vmem:[#allocation7 + $0x960] sm:$0xff] }
 0x925   :  { %v3531_v15 = vpack.c.bf16 %v1435_v10, %v1433_v9  ;;  %v1467_v9 = vld [vmem:[#allocation7 + $0xa70] sm:$0xff]  ;;  %v1470_v10 = vld [vmem:[#allocation7 + $0xa88] sm:$0xff] }
 0x927   :  { %3500 = vmatpush1.bf16.msra.mxu0 %v3499_v17  ;;  %v3533_v17 = vpack.c.bf16 %v1440_v14, %v1438_v12 }
 0x928   :  { %3502 = vmatprep.subr.bf16.mxu0 %v3501_v18  ;;  %v1437_v18 = vld [vmem:[#allocation7 + $0x980] sm:$0xff] }
 0x929   :  { %v3535_v25 = vpack.c.bf16 %v1439_v19, %v1437_v18  ;;  %v1474_v18 = vld [vmem:[#allocation7 + $0xaa8] sm:$0xff]  ;;  %v1476_v19 = vld [vmem:[#allocation7 + $0xab8] sm:$0xff] }
 0x92b   :  { %3504 = vmatpush1.bf16.msra.mxu0 %v3503_v26  ;;  %v3537_v26 = vpack.c.bf16 %v1444_v24, %v1442_v21  ;;  %v1473_v24 = vld [vmem:[#allocation7 + $0xaa0] sm:$0xff] }
 0x92c   :  { %3506 = vmatprep.subr.bf16.mxu0 %v3505_v27  ;;  %v1441_v27 = vld [vmem:[#allocation7 + $0x9a0] sm:$0xff] }
 0x92d   :  { %v3539_v30 = vpack.c.bf16 %v1443_v28, %v1441_v27  ;;  %v1480_v27 = vld [vmem:[#allocation7 + $0xad8] sm:$0xff] }
 0x92f   :  { %3508 = vmatpush1.bf16.msra.mxu0 %v3507_v6  ;;  %v3541_v6 = vpack.c.bf16 %v1448_v0, %v1446_v29  ;;  %v1477_v0 = vld [vmem:[#allocation7 + $0xac0] sm:$0xff] }
 0x930   :  { %3510 = vmatprep.subr.bf16.mxu0 %v3509_v31  ;;  %v1445_v31 = vld [vmem:[#allocation7 + $0x9c0] sm:$0xff] }
 0x931   :  { %v3543_v1 = vpack.c.bf16 %v1447_v11, %v1445_v31  ;;  %v1484_v31 = vld [vmem:[#allocation7 + $0xaf8] sm:$0xff] }
 0x933   :  { %3512 = vmatpush1.bf16.msra.mxu0 %v3511_v37  ;;  %v3545_v37 = vpack.c.bf16 %v1452_v35, %v1450_v4  ;;  %v1481_v35 = vld [vmem:[#allocation7 + $0xae0] sm:$0xff] }
 0x934   :  { %3514 = vmatprep.subr.bf16.mxu0 %v3513_v39  ;;  %v1449_v39 = vld [vmem:[#allocation7 + $0x9e0] sm:$0xff] }
 0x935   :  { %v3547_v43 = vpack.c.bf16 %v1451_v41, %v1449_v39  ;;  %v1488_v39 = vld [vmem:[#allocation7 + $0xb18] sm:$0xff] }
 0x937   :  { %3516 = vmatpush1.bf16.msra.mxu0 %v3515_v44  ;;  %v3549_v44 = vpack.c.bf16 %v1456_v16, %v1454_v42  ;;  %v1485_v16 = vld [vmem:[#allocation7 + $0xb00] sm:$0xff] }
 0x938   :  { %3518 = vmatprep.subr.bf16.mxu0 %v3517_v46  ;;  %v1453_v46 = vld [vmem:[#allocation7 + $0xa00] sm:$0xff] }
 0x939   :  { %v3551_v50 = vpack.c.bf16 %v1455_v47, %v1453_v46  ;;  %v1492_v46 = vld [vmem:[#allocation7 + $0xb38] sm:$0xff] }
 0x93b   :  { %3520 = vmatpush1.bf16.msra.mxu0 %v3519_v51  ;;  %v3553_v51 = vpack.c.bf16 %v1460_v49, %v1458_v48  ;;  %v1489_v49 = vld [vmem:[#allocation7 + $0xb20] sm:$0xff] }
 0x93c   :  { %3522 = vmatprep.subr.bf16.mxu0 %v3521_v52  ;;  %v1457_v52 = vld [vmem:[#allocation7 + $0xa20] sm:$0xff] }
 0x93d   :  { %v3555_v56 = vpack.c.bf16 %v1459_v53, %v1457_v52  ;;  %v1496_v52 = vld [vmem:[#allocation7 + $0xb58] sm:$0xff] }
 0x93f   :  { %3524 = vmatpush1.bf16.msra.mxu0 %v3523_v57  ;;  %v3557_v57 = vpack.c.bf16 %v1464_v55, %v1462_v54  ;;  %v1493_v55 = vld [vmem:[#allocation7 + $0xb40] sm:$0xff] }
 0x940   :  { %3526 = vmatprep.subr.bf16.mxu0 %v3525_v59  ;;  %v1461_v59 = vld [vmem:[#allocation7 + $0xa40] sm:$0xff] }
 0x941   :  { %v3559_v5 = vpack.c.bf16 %v1463_v61, %v1461_v59  ;;  %v1500_v59 = vld [vmem:[#allocation7 + $0xb78] sm:$0xff] }
 0x943   :  { %3528 = vmatpush1.bf16.msra.mxu0 %v3527_v7  ;;  %v3561_v7 = vpack.c.bf16 %v1468_v63, %v1466_v62  ;;  %v1497_v63 = vld [vmem:[#allocation7 + $0xb60] sm:$0xff] }
 0x944   :  { %3530 = vmatprep.subr.bf16.mxu0 %v3529_v8  ;;  %v1465_v8 = vld [vmem:[#allocation7 + $0xa60] sm:$0xff] }
 0x945   :  { %v3563_v12 = vpack.c.bf16 %v1467_v9, %v1465_v8  ;;  %v1504_v8 = vld [vmem:[#allocation7 + $0xb98] sm:$0xff] }
 0x947   :  { %3532 = vmatpush1.bf16.msra.mxu0 %v3531_v15  ;;  %v1469_v15 = vld [vmem:[#allocation7 + $0xa80] sm:$0xff] }
 0x948   :  { %3534 = vmatprep.subr.bf16.mxu0 %v3533_v17  ;;  %v1471_v17 = vld [vmem:[#allocation7 + $0xa90] sm:$0xff] }
 0x949   :  { %v3567_v21 = vpack.c.bf16 %v1471_v17, %v1469_v15  ;;  %v1508_v15 = vld [vmem:[#allocation7 + $0xbb8] sm:$0xff] }
 0x94b   :  { %3536 = vmatpush1.bf16.msra.mxu0 %v3535_v25  ;;  %v1475_v25 = vld [vmem:[#allocation7 + $0xab0] sm:$0xff] }
 0x94c   :  { %3538 = vmatprep.subr.bf16.mxu0 %v3537_v26  ;;  %v1478_v26 = vld [vmem:[#allocation7 + $0xac8] sm:$0xff]  ;;  %v3571_v28 = vpack.c.bf16 %v1475_v25, %v1473_v24  ;;  %v1512_v24 = vld [vmem:[#allocation7 + $0xbd8] sm:$0xff] }
 0x94d   :  { %v3573_v29 = vpack.c.bf16 %v1480_v27, %v1478_v26  ;;  %v1509_v27 = vld [vmem:[#allocation7 + $0xbc0] sm:$0xff] }
 0x94f   :  { %3540 = vmatpush1.bf16.msra.mxu0 %v3539_v30  ;;  %v1479_v30 = vld [vmem:[#allocation7 + $0xad0] sm:$0xff] }
 0x950   :  { %3542 = vmatprep.subr.bf16.mxu0 %v3541_v6  ;;  %v1482_v6 = vld [vmem:[#allocation7 + $0xae8] sm:$0xff]  ;;  %v3575_v11 = vpack.c.bf16 %v1479_v30, %v1477_v0  ;;  %v1516_v0 = vld [vmem:[#allocation7 + $0xbf8] sm:$0xff] }
 0x951   :  { %v3577_v4 = vpack.c.bf16 %v1484_v31, %v1482_v6  ;;  %v1513_v31 = vld [vmem:[#allocation7 + $0xbe0] sm:$0xff] }
 0x953   :  { %3544 = vmatpush1.bf16.msra.mxu0 %v3543_v1  ;;  %v1483_v1 = vld [vmem:[#allocation7 + $0xaf0] sm:$0xff] }
 0x954   :  { %3546 = vmatprep.subr.bf16.mxu0 %v3545_v37  ;;  %v1486_v37 = vld [vmem:[#allocation7 + $0xb08] sm:$0xff]  ;;  %v3579_v41 = vpack.c.bf16 %v1483_v1, %v1481_v35 }
 0x955   :  { %v3581_v42 = vpack.c.bf16 %v1488_v39, %v1486_v37 }
 0x957   :  { %3548 = vmatpush1.bf16.msra.mxu0 %v3547_v43  ;;  %v1487_v43 = vld [vmem:[#allocation7 + $0xb10] sm:$0xff] }
 0x958   :  { %3550 = vmatprep.subr.bf16.mxu0 %v3549_v44  ;;  %v1490_v44 = vld [vmem:[#allocation7 + $0xb28] sm:$0xff]  ;;  %v3583_v47 = vpack.c.bf16 %v1487_v43, %v1485_v16  ;;  %v2151_v16 = vld [vmem:[#allocation7 + $0xc00] sm:$0xff] }
 0x959   :  { %v3585_v48 = vpack.c.bf16 %v1492_v46, %v1490_v44  ;;  %v2153_v44 = vld [vmem:[#allocation7 + $0xc10] sm:$0xff]  ;;  %v2156_v46 = vld [vmem:[#allocation7 + $0xc28] sm:$0xff] }
 0x95a   :  { %1672 = vmatmul.mubr.f32.vlgmr.msra.gmra.mrb[16].mxu0 %v4352_v36  ;;  %v1472_v36 = vld [vmem:[#allocation7 + $0xa98] sm:$0xff] }
 0x95b   :  { %1677 = vmatprep.mubr.f32.mxu0 %v4360_v38  ;;  %3552 = vmatpush1.bf16.msra.mxu0 %v3551_v50  ;;  %v3565_v14 = vpack.c.bf16 %v1472_v36, %v1470_v10  ;;  %v1491_v50 = vld [vmem:[#allocation7 + $0xb30] sm:$0xff]  ;;  %v1501_v36 = vld [vmem:[#allocation7 + $0xb80] sm:$0xff] }
 0x95c   :  { %3554 = vmatprep.subr.bf16.mxu0 %v3553_v51  ;;  %v1494_v51 = vld [vmem:[#allocation7 + $0xb48] sm:$0xff]  ;;  %v3587_v53 = vpack.c.bf16 %v1491_v50, %v1489_v49  ;;  %v2155_v50 = vld [vmem:[#allocation7 + $0xc20] sm:$0xff] }
 0x95d   :  { %v3589_v54 = vpack.c.bf16 %v1496_v52, %v1494_v51  ;;  %v2157_v51 = vld [vmem:[#allocation7 + $0xc30] sm:$0xff] }
 0x95e   :  { %1678 = vmatmul.mubr.f32.gmra.mrb[18].mxu0 %v4350_v34  ;;  %v3569_v34 = vpack.c.bf16 %v1476_v19, %v1474_v18  ;;  %v1505_v19 = vld [vmem:[#allocation7 + $0xba0] sm:$0xff]  ;;  %v3639_v52 = vpack.c.bf16 %v2157_v51, %v2155_v50  ;;  %v2193_v50 = vld [vmem:[#allocation7 + $0xd50] sm:$0xff]  ;;  %v2196_v51 = vld [vmem:[#allocation7 + $0xd68] sm:$0xff] }
 0x95f   :  { %3556 = vmatpush1.bf16.msra.mxu0 %v3555_v56  ;;  %v1495_v56 = vld [vmem:[#allocation7 + $0xb50] sm:$0xff] }
 0x960   :  { %3558 = vmatprep.subr.bf16.mxu0 %v3557_v57  ;;  %v1498_v57 = vld [vmem:[#allocation7 + $0xb68] sm:$0xff]  ;;  %v3591_v61 = vpack.c.bf16 %v1495_v56, %v1493_v55  ;;  %v2166_v55 = vld [vmem:[#allocation7 + $0xc78] sm:$0xff] }
 0x961   :  { %v3593_v62 = vpack.c.bf16 %v1500_v59, %v1498_v57  ;;  %v2163_v59 = vld [vmem:[#allocation7 + $0xc60] sm:$0xff] }
 0x963   :  { %3560 = vmatpush1.bf16.msra.mxu0 %v3559_v5  ;;  %v1499_v5 = vld [vmem:[#allocation7 + $0xb70] sm:$0xff] }
 0x964   :  { %3562 = vmatprep.subr.bf16.mxu0 %v3561_v7  ;;  %v1502_v7 = vld [vmem:[#allocation7 + $0xb88] sm:$0xff]  ;;  %v3595_v9 = vpack.c.bf16 %v1499_v5, %v1497_v63  ;;  %v2170_v63 = vld [vmem:[#allocation7 + $0xc98] sm:$0xff] }
 0x965   :  { %v3597_v10 = vpack.c.bf16 %v1504_v8, %v1502_v7  ;;  %v2167_v8 = vld [vmem:[#allocation7 + $0xc80] sm:$0xff] }
 0x967   :  { %3564 = vmatpush1.bf16.msra.mxu0 %v3563_v12  ;;  %v1503_v12 = vld [vmem:[#allocation7 + $0xb90] sm:$0xff] }
 0x968   :  { %3566 = vmatprep.subr.bf16.mxu0 %v3565_v14  ;;  %v1506_v14 = vld [vmem:[#allocation7 + $0xba8] sm:$0xff]  ;;  %v3599_v17 = vpack.c.bf16 %v1503_v12, %v1501_v36  ;;  %v2174_v36 = vld [vmem:[#allocation7 + $0xcb8] sm:$0xff] }
 0x969   :  { %v3601_v18 = vpack.c.bf16 %v1508_v15, %v1506_v14  ;;  %v2171_v15 = vld [vmem:[#allocation7 + $0xca0] sm:$0xff] }
 0x96b   :  { %3568 = vmatpush1.bf16.msra.mxu0 %v3567_v21  ;;  %v1507_v21 = vld [vmem:[#allocation7 + $0xbb0] sm:$0xff] }
 0x96c   :  { %3570 = vmatprep.subr.bf16.mxu0 %v3569_v34  ;;  %v1510_v34 = vld [vmem:[#allocation7 + $0xbc8] sm:$0xff]  ;;  %v3603_v25 = vpack.c.bf16 %v1507_v21, %v1505_v19  ;;  %v2178_v19 = vld [vmem:[#allocation7 + $0xcd8] sm:$0xff] }
 0x96d   :  { %v3605_v26 = vpack.c.bf16 %v1512_v24, %v1510_v34  ;;  %v2175_v24 = vld [vmem:[#allocation7 + $0xcc0] sm:$0xff] }
 0x96f   :  { %3572 = vmatpush1.bf16.msra.mxu0 %v3571_v28  ;;  %v1511_v28 = vld [vmem:[#allocation7 + $0xbd0] sm:$0xff] }
 0x970   :  { %3574 = vmatprep.subr.bf16.mxu0 %v3573_v29  ;;  %v1514_v29 = vld [vmem:[#allocation7 + $0xbe8] sm:$0xff]  ;;  %v3607_v30 = vpack.c.bf16 %v1511_v28, %v1509_v27  ;;  %v2182_v27 = vld [vmem:[#allocation7 + $0xcf8] sm:$0xff] }
 0x971   :  { %v3609_v6 = vpack.c.bf16 %v1516_v0, %v1514_v29  ;;  %v2179_v0 = vld [vmem:[#allocation7 + $0xce0] sm:$0xff] }
 0x973   :  { %3576 = vmatpush1.bf16.msra.mxu0 %v3575_v11  ;;  %v1515_v11 = vld [vmem:[#allocation7 + $0xbf0] sm:$0xff] }
 0x974   :  { %3578 = vmatprep.subr.bf16.mxu0 %v3577_v4  ;;  %v3611_v4 = vpack.c.bf16 %v1515_v11, %v1513_v31  ;;  %v2186_v31 = vld [vmem:[#allocation7 + $0xd18] sm:$0xff] }
 0x977   :  { %3580 = vmatpush1.bf16.msra.mxu0 %v3579_v41  ;;  %v2152_v41 = vld [vmem:[#allocation7 + $0xc08] sm:$0xff] }
 0x978   :  { %3582 = vmatprep.subr.bf16.mxu0 %v3581_v42  ;;  %v2154_v42 = vld [vmem:[#allocation7 + $0xc18] sm:$0xff] }
 0x979   :  { %v3633_v43 = vpack.c.bf16 %v2154_v42, %v2152_v41 }
 0x97b   :  { %3584 = vmatpush1.bf16.msra.mxu0 %v3583_v47  ;;  %v2158_v47 = vld [vmem:[#allocation7 + $0xc38] sm:$0xff] }
 0x97c   :  { %3586 = vmatprep.subr.bf16.mxu0 %v3585_v48  ;;  %v3635_v48 = vpack.c.bf16 %v2153_v44, %v2151_v16  ;;  %v3637_v49 = vpack.c.bf16 %v2158_v47, %v2156_v46  ;;  %v2187_v16 = vld [vmem:[#allocation7 + $0xd20] sm:$0xff]  ;;  %v2192_v44 = vld [vmem:[#allocation7 + $0xd48] sm:$0xff]  ;;  %v2194_v46 = vld [vmem:[#allocation7 + $0xd58] sm:$0xff] }
 0x97f   :  { %3588 = vmatpush1.bf16.msra.mxu0 %v3587_v53  ;;  %v2159_v53 = vld [vmem:[#allocation7 + $0xc40] sm:$0xff] }
 0x980   :  { %3590 = vmatprep.subr.bf16.mxu0 %v3589_v54  ;;  %v2164_v54 = vld [vmem:[#allocation7 + $0xc68] sm:$0xff] }
 0x981   :  { %v3645_v57 = vpack.c.bf16 %v2166_v55, %v2164_v54  ;;  %v2202_v54 = vld [vmem:[#allocation7 + $0xd98] sm:$0xff] }
 0x983   :  { %3592 = vmatpush1.bf16.msra.mxu0 %v3591_v61  ;;  %v2165_v61 = vld [vmem:[#allocation7 + $0xc70] sm:$0xff] }
 0x984   :  { %3594 = vmatprep.subr.bf16.mxu0 %v3593_v62  ;;  %v2168_v62 = vld [vmem:[#allocation7 + $0xc88] sm:$0xff]  ;;  %v3647_v5 = vpack.c.bf16 %v2165_v61, %v2163_v59  ;;  %v2201_v59 = vld [vmem:[#allocation7 + $0xd90] sm:$0xff] }
 0x985   :  { %v3649_v7 = vpack.c.bf16 %v2170_v63, %v2168_v62  ;;  %v2204_v61 = vld [vmem:[#allocation7 + $0xda8] sm:$0xff]  ;;  %v2206_v62 = vld [vmem:[#allocation7 + $0xdb8] sm:$0xff] }
 0x987   :  { %3596 = vmatpush1.bf16.msra.mxu0 %v3595_v9  ;;  %v2169_v9 = vld [vmem:[#allocation7 + $0xc90] sm:$0xff] }
 0x988   :  { %3598 = vmatprep.subr.bf16.mxu0 %v3597_v10  ;;  %v2172_v10 = vld [vmem:[#allocation7 + $0xca8] sm:$0xff]  ;;  %v3651_v12 = vpack.c.bf16 %v2169_v9, %v2167_v8  ;;  %v2205_v8 = vld [vmem:[#allocation7 + $0xdb0] sm:$0xff] }
 0x989   :  { %v3653_v14 = vpack.c.bf16 %v2174_v36, %v2172_v10  ;;  %v2208_v9 = vld [vmem:[#allocation7 + $0xdc8] sm:$0xff]  ;;  %v2210_v10 = vld [vmem:[#allocation7 + $0xdd8] sm:$0xff] }
 0x98b   :  { %3600 = vmatpush1.bf16.msra.mxu0 %v3599_v17  ;;  %v2173_v17 = vld [vmem:[#allocation7 + $0xcb0] sm:$0xff] }
 0x98c   :  { %3602 = vmatprep.subr.bf16.mxu0 %v3601_v18  ;;  %v2176_v18 = vld [vmem:[#allocation7 + $0xcc8] sm:$0xff]  ;;  %v3655_v21 = vpack.c.bf16 %v2173_v17, %v2171_v15  ;;  %v2209_v15 = vld [vmem:[#allocation7 + $0xdd0] sm:$0xff] }
 0x98d   :  { %v3657_v34 = vpack.c.bf16 %v2178_v19, %v2176_v18  ;;  %v1518_v18 = vld [vmem:[#allocation8 + $0x2] sm:$0x3] }
 0x98e   :  { %v1523_v19 = vrot.slane %v1518_v18, %v4322_v58 }
 0x98f   :  { %3604 = vmatpush1.bf16.msra.mxu0 %v3603_v25  ;;  %v2177_v25 = vld [vmem:[#allocation7 + $0xcd0] sm:$0xff] }
 0x990   :  { %3606 = vmatprep.subr.bf16.mxu0 %v3605_v26  ;;  %v2180_v26 = vld [vmem:[#allocation7 + $0xce8] sm:$0xff]  ;;  %v3659_v28 = vpack.c.bf16 %v2177_v25, %v2175_v24 }
 0x991   :  { %v3661_v29 = vpack.c.bf16 %v2182_v27, %v2180_v26 }
 0x993   :  { %3608 = vmatpush1.bf16.msra.mxu0 %v3607_v30  ;;  %v2181_v30 = vld [vmem:[#allocation7 + $0xcf0] sm:$0xff] }
 0x994   :  { %3610 = vmatprep.subr.bf16.mxu0 %v3609_v6  ;;  %v2184_v6 = vld [vmem:[#allocation7 + $0xd08] sm:$0xff]  ;;  %v3663_v11 = vpack.c.bf16 %v2181_v30, %v2179_v0 }
 0x997   :  { %3612 = vmatpush1.bf16.msra.mxu0 %v3611_v4  ;;  %v3665_v4 = vpack.c.bf16 %v2186_v31, %v2184_v6 }
 0x998   :  { %3634 = vmatprep.subr.bf16.mxu0 %v3633_v43  ;;  %v2189_v43 = vld [vmem:[#allocation7 + $0xd30] sm:$0xff] }
 0x999   :  { %v3671_v47 = vpack.c.bf16 %v2189_v43, %v2187_v16 }
 0x9ed   :  { %v3153_v35 = vpop.f32.mrb[14].mxu0 }
 0x9ee   :  { %v1313_v1 = vpop.f32.mrb[15].mxu0  ;;  %v1323_v39 = vsub.f32 %v3153_v35, %v4360_v38  ;;  %v2162_v38 = vld [vmem:[#allocation7 + $0xc58] sm:$0xff]  ;;  %v2183_v35 = vld [vmem:[#allocation7 + $0xd00] sm:$0xff] }
 0x9ef   :  { %v1322_v37 = vsub.f32 %v1313_v1, %v4362_v40  ;;  %v2160_v40 = vld [vmem:[#allocation7 + $0xc48] sm:$0xff]  ;;  %v2185_v1 = vld [vmem:[#allocation7 + $0xd10] sm:$0xff] }
 0x9f0   :  { %v3667_v41 = vpack.c.bf16 %v2185_v1, %v2183_v35 }
 0x9f1   :  { %1748 = vmatprep.mubr.f32.mxu0 %v1322_v37  ;;  %v2188_v37 = vld [vmem:[#allocation7 + $0xd28] sm:$0xff] }
 0x9f2   :  { %1749 = vmatmul.mubr.f32.vlgmr.msra.gmra.mrb[16].mxu0 %v4374_v45  ;;  %v3641_v45 = vpack.c.bf16 %v2162_v38, %v2160_v40  ;;  %v2198_v40 = vld [vmem:[#allocation7 + $0xd78] sm:$0xff] }
 0x9f3   :  { %1754 = vmatprep.mubr.f32.mxu0 %v1323_v39  ;;  %3636 = vmatpush1.bf16.msra.mxu0 %v3635_v48  ;;  %v2190_v39 = vld [vmem:[#allocation7 + $0xd38] sm:$0xff]  ;;  %v3673_v48 = vpack.c.bf16 %v2194_v46, %v2192_v44 }
 0x9f4   :  { %3638 = vmatprep.subr.bf16.mxu0 %v3637_v49  ;;  %v3669_v42 = vpack.c.bf16 %v2190_v39, %v2188_v37  ;;  %v2191_v49 = vld [vmem:[#allocation7 + $0xd40] sm:$0xff] }
 0x9f5   :  { %v3675_v38 = vpack.c.bf16 %v2193_v50, %v2191_v49  ;;  %v2211_v39 = vld [vmem:[#allocation7 + $0xde0] sm:$0xff]  ;;  %v2218_v49 = vld [vmem:[#allocation7 + $0xe18] sm:$0xff] }
 0x9f6   :  { %1755 = vmatmul.mubr.f32.gmra.mrb[18].mxu0 %v4371_v20  ;;  %v2161_v20 = vld [vmem:[#allocation7 + $0xc50] sm:$0xff]  ;;  %v2215_v50 = vld [vmem:[#allocation7 + $0xe00] sm:$0xff] }
 0x9f7   :  { %3640 = vmatpush1.bf16.msra.mxu0 %v3639_v52  ;;  %v3643_v56 = vpack.c.bf16 %v2161_v20, %v2159_v53  ;;  %v3677_v52 = vpack.c.bf16 %v2198_v40, %v2196_v51  ;;  %v2197_v53 = vld [vmem:[#allocation7 + $0xd70] sm:$0xff]  ;;  %v2200_v20 = vld [vmem:[#allocation7 + $0xd88] sm:$0xff] }
 0x9f8   :  { %3642 = vmatprep.subr.bf16.mxu0 %v3641_v45  ;;  %v2195_v45 = vld [vmem:[#allocation7 + $0xd60] sm:$0xff]  ;;  %v2217_v40 = vld [vmem:[#allocation7 + $0xe10] sm:$0xff] }
 0x9f9   :  { %v3679_v55 = vpack.c.bf16 %v2197_v53, %v2195_v45  ;;  %v3699_v45 = vpack.c.bf16 %v2217_v40, %v2215_v50  ;;  %v2256_v50 = vld [vmem:[#allocation7 + $0xf48] sm:$0xff] }
 0x9fb   :  { %3644 = vmatpush1.bf16.msra.mxu0 %v3643_v56  ;;  %v3681_v56 = vpack.c.bf16 %v2202_v54, %v2200_v20  ;;  %v2219_v20 = vld [vmem:[#allocation7 + $0xe20] sm:$0xff]  ;;  %v2221_v54 = vld [vmem:[#allocation7 + $0xe30] sm:$0xff] }
 0x9fc   :  { %3646 = vmatprep.subr.bf16.mxu0 %v3645_v57  ;;  %v2199_v57 = vld [vmem:[#allocation7 + $0xd80] sm:$0xff] }
 0x9fd   :  { %v3683_v63 = vpack.c.bf16 %v2201_v59, %v2199_v57  ;;  %v3703_v57 = vpack.c.bf16 %v2221_v54, %v2219_v20  ;;  %v2223_v59 = vld [vmem:[#allocation7 + $0xe40] sm:$0xff]  ;;  %v2262_v20 = vld [vmem:[#allocation7 + $0xf78] sm:$0xff] }
 0x9ff   :  { %3648 = vmatpush1.bf16.msra.mxu0 %v3647_v5  ;;  %v3685_v5 = vpack.c.bf16 %v2206_v62, %v2204_v61  ;;  %v2228_v61 = vld [vmem:[#allocation7 + $0xe68] sm:$0xff]  ;;  %v2230_v62 = vld [vmem:[#allocation7 + $0xe78] sm:$0xff] }
 0xa00   :  { %3650 = vmatprep.subr.bf16.mxu0 %v3649_v7  ;;  %v2203_v7 = vld [vmem:[#allocation7 + $0xda0] sm:$0xff] }
 0xa01   :  { %v3687_v36 = vpack.c.bf16 %v2205_v8, %v2203_v7  ;;  %v2227_v7 = vld [vmem:[#allocation7 + $0xe60] sm:$0xff]  ;;  %v2229_v8 = vld [vmem:[#allocation7 + $0xe70] sm:$0xff] }
 0xa03   :  { %3652 = vmatpush1.bf16.msra.mxu0 %v3651_v12  ;;  %v3689_v12 = vpack.c.bf16 %v2210_v10, %v2208_v9  ;;  %v2232_v9 = vld [vmem:[#allocation7 + $0xe88] sm:$0xff]  ;;  %v2234_v10 = vld [vmem:[#allocation7 + $0xe98] sm:$0xff] }
 0xa04   :  { %3654 = vmatprep.subr.bf16.mxu0 %v3653_v14  ;;  %v2207_v14 = vld [vmem:[#allocation7 + $0xdc0] sm:$0xff] }
 0xa05   :  { %v3691_v17 = vpack.c.bf16 %v2209_v15, %v2207_v14  ;;  %v2231_v14 = vld [vmem:[#allocation7 + $0xe80] sm:$0xff]  ;;  %v2233_v15 = vld [vmem:[#allocation7 + $0xe90] sm:$0xff] }
 0xa07   :  { %3656 = vmatpush1.bf16.msra.mxu0 %v3655_v21  ;;  %v1527_v21 = vrot.slane %v1518_v18, %v4324_v60  ;;  %v2238_v18 = vld [vmem:[#allocation7 + $0xeb8] sm:$0xff] }
 0xa08   :  { %3658 = vmatprep.subr.bf16.mxu0 %v3657_v34  ;;  %v1597_v34 = vadd.f32 %v4342_v32, %v1523_v19 }
 0xa09   :  { %v1599_v24 = vadd.f32 %v4344_v13, %v1527_v21  ;;  %v1605_v30 = vadd.f32 %v4348_v2, %v1527_v21  ;;  %v2212_v13 = vld [vmem:[#allocation7 + $0xde8] sm:$0xff] }
 0xa0b   :  { %3660 = vmatpush1.bf16.msra.mxu0 %v3659_v28 }
 0xa0c   :  { %3662 = vmatprep.subr.bf16.mxu0 %v3661_v29  ;;  %v1603_v29 = vadd.f32 %v4346_v33, %v1523_v19  ;;  %v2214_v33 = vld [vmem:[#allocation7 + $0xdf8] sm:$0xff]  ;;  %v3715_v19 = vpack.c.bf16 %v2233_v15, %v2231_v14 }
 0xa0d   :  { %v3693_v2 = vpack.c.bf16 %v2214_v33, %v2212_v13  ;;  %v2250_v13 = vld [vmem:[#allocation7 + $0xf18] sm:$0xff] }
 0xa0e   :  { %v2274_v14 = vld [vmem:[#allocation7 + $0xfd8] sm:$0xff] }
 0xa0f   :  { %3664 = vmatpush1.bf16.msra.mxu0 %v3663_v11 }
 0xa10   :  { %3666 = vmatprep.subr.bf16.mxu0 %v3665_v4 }
 0xa13   :  { %3668 = vmatpush1.bf16.msra.mxu0 %v3667_v41  ;;  %v2213_v41 = vld [vmem:[#allocation7 + $0xdf0] sm:$0xff] }
 0xa14   :  { %3670 = vmatprep.subr.bf16.mxu0 %v3669_v42  ;;  %v3695_v42 = vpack.c.bf16 %v2213_v41, %v2211_v39  ;;  %v2247_v39 = vld [vmem:[#allocation7 + $0xf00] sm:$0xff]  ;;  %v2249_v41 = vld [vmem:[#allocation7 + $0xf10] sm:$0xff] }
 0xa17   :  { %3672 = vmatpush1.bf16.msra.mxu0 %v3671_v47 }
 0xa18   :  { %3674 = vmatprep.subr.bf16.mxu0 %v3673_v48  ;;  %v2216_v48 = vld [vmem:[#allocation7 + $0xe08] sm:$0xff] }
 0xa19   :  { %v3697_v51 = vpack.c.bf16 %v2218_v49, %v2216_v48  ;;  %v2251_v48 = vld [vmem:[#allocation7 + $0xf20] sm:$0xff]  ;;  %v2253_v49 = vld [vmem:[#allocation7 + $0xf30] sm:$0xff] }
 0xa1a   :  { %v3735_v40 = vpack.c.bf16 %v2253_v49, %v2251_v48  ;;  %v2285_v48 = vld [vmem:[#allocation7 + $0x1030] sm:$0xff]  ;;  %v2288_v49 = vld [vmem:[#allocation7 + $0x1048] sm:$0xff] }
 0xa1b   :  { %3676 = vmatpush1.bf16.msra.mxu0 %v3675_v38  ;;  %v2220_v38 = vld [vmem:[#allocation7 + $0xe28] sm:$0xff] }
 0xa1c   :  { %3678 = vmatprep.subr.bf16.mxu0 %v3677_v52  ;;  %v2222_v52 = vld [vmem:[#allocation7 + $0xe38] sm:$0xff] }
 0xa1d   :  { %v3701_v53 = vpack.c.bf16 %v2222_v52, %v2220_v38  ;;  %v2255_v52 = vld [vmem:[#allocation7 + $0xf40] sm:$0xff] }
 0xa1f   :  { %3680 = vmatpush1.bf16.msra.mxu0 %v3679_v55  ;;  %v2224_v55 = vld [vmem:[#allocation7 + $0xe48] sm:$0xff] }
 0xa20   :  { %3682 = vmatprep.subr.bf16.mxu0 %v3681_v56  ;;  %v2226_v56 = vld [vmem:[#allocation7 + $0xe58] sm:$0xff] }
 0xa23   :  { %3684 = vmatpush1.bf16.msra.mxu0 %v3683_v63 }
 0xa24   :  { %3686 = vmatprep.subr.bf16.mxu0 %v3685_v5  ;;  %v3709_v5 = vpack.c.bf16 %v2230_v62, %v2228_v61  ;;  %v2263_v62 = vld [vmem:[#allocation7 + $0xf80] sm:$0xff] }
 0xa27   :  { %3688 = vmatpush1.bf16.msra.mxu0 %v3687_v36  ;;  %v3711_v36 = vpack.c.bf16 %v2229_v8, %v2227_v7  ;;  %v2270_v7 = vld [vmem:[#allocation7 + $0xfb8] sm:$0xff] }
 0xa28   :  { %3690 = vmatprep.subr.bf16.mxu0 %v3689_v12  ;;  %v3713_v12 = vpack.c.bf16 %v2234_v10, %v2232_v9  ;;  %v2267_v10 = vld [vmem:[#allocation7 + $0xfa0] sm:$0xff] }
 0xa2b   :  { %3692 = vmatpush1.bf16.msra.mxu0 %v3691_v17  ;;  %v2236_v17 = vld [vmem:[#allocation7 + $0xea8] sm:$0xff] }
 0xa2c   :  { %3694 = vmatprep.subr.bf16.mxu0 %v3693_v2  ;;  %v3717_v21 = vpack.c.bf16 %v2238_v18, %v2236_v17  ;;  %v2271_v18 = vld [vmem:[#allocation7 + $0xfc0] sm:$0xff] }
 0xa2f   :  { %3696 = vmatpush1.bf16.msra.mxu0 %v3695_v42  ;;  %v2252_v42 = vld [vmem:[#allocation7 + $0xf28] sm:$0xff] }
 0xa30   :  { %3698 = vmatprep.subr.bf16.mxu0 %v3697_v51  ;;  %v2258_v51 = vld [vmem:[#allocation7 + $0xf58] sm:$0xff] }
 0xa31   :  { %v3737_v38 = vpack.c.bf16 %v2258_v51, %v2256_v50  ;;  %v2290_v50 = vld [vmem:[#allocation7 + $0x1058] sm:$0xff] }
 0xac5   :  { %v1750_v25 = vpop.f32.mrb[16].mxu0 }
 0xac6   :  { %v3898_v26 = vadd.f32 %v1750_v25, %v1597_v34  ;;  %v1752_v27 = vpop.f32.mrb[17].mxu0  ;;  %v2235_v34 = vld [vmem:[#allocation7 + $0xea0] sm:$0xff]  ;;  %v2240_v25 = vld [vmem:[#allocation7 + $0xec8] sm:$0xff] }
 0xac7   :  { %v3900_v28 = vadd.f32 %v1752_v27, %v1599_v24  ;;  %v2237_v24 = vld [vmem:[#allocation7 + $0xeb0] sm:$0xff] }
 0xac8   :  { %v1761_v0 = vmax.f32 %v3898_v26, 0.0  ;;  %v2242_v26 = vld [vmem:[#allocation7 + $0xed8] sm:$0xff]  ;;  %v3719_v27 = vpack.c.bf16 %v2237_v24, %v2235_v34 }
 0xac9   :  { %v1756_v6 = vpop.f32.mrb[18].mxu0 }
 0xaca   :  { %v4394_v31 = vadd.f32 %v3900_v28, %v1761_v0  ;;  %v3902_v11 = vadd.f32 %v1756_v6, %v1603_v29  ;;  %v1758_v4 = vpop.f32.mrb[19].mxu0  ;;  %v3721_v28 = vpack.c.bf16 %v2242_v26, %v2240_v25  ;;  %v2239_v29 = vld [vmem:[#allocation7 + $0xec0] sm:$0xff]  ;;  %v2241_v0 = vld [vmem:[#allocation7 + $0xed0] sm:$0xff]  ;;  %v2246_v6 = vld [vmem:[#allocation7 + $0xef8] sm:$0xff] }
 0xacb   :  { %v3904_v35 = vadd.f32 %v1758_v4, %v1605_v30  ;;  %v2244_v30 = vld [vmem:[#allocation7 + $0xee8] sm:$0xff] }
 0xacc   :  { %v1762_v1 = vmax.f32 %v3902_v11, 0.0  ;;  %v3723_v11 = vpack.c.bf16 %v2241_v0, %v2239_v29  ;;  %v3725_v4 = vpack.c.bf16 %v2246_v6, %v2244_v30  ;;  %v4430_v29 = vld [vmem:[#allocation2] sm:$0xff]  ;;  %v2278_v0 = vld [vmem:[#allocation7 + $0xff8] sm:$0xff]  ;;  %v2277_v6 = vld [vmem:[#allocation7 + $0xff0] sm:$0xff] }
 0xace   :  { %v4396_v37 = vadd.f32 %v3904_v35, %v1762_v1  ;;  %v2243_v35 = vld [vmem:[#allocation7 + $0xee0] sm:$0xff]  ;;  %v2245_v1 = vld [vmem:[#allocation7 + $0xef0] sm:$0xff] }
 0xacf   :  { %v3727_v33 = vpack.c.bf16 %v2245_v1, %v2243_v35 }
 0xad0   :  { %v3613_v32 = vpack.c.bf16 %v4396_v37, %v4394_v31 }
 0xad2   :  { %3614 = vmatprep.subr.bf16.mxu1 %v3613_v32 }
 0xad3   :  { %3616 = vmatpush3.bf16.msra.mxu1 %v3613_v32  ;;  %v2248_v32 = vld [vmem:[#allocation7 + $0xf08] sm:$0xff] }
 0xad4   :  { %v3729_v2 = vpack.c.bf16 %v2250_v13, %v2248_v32 }
 0xad6   :  { %3159 = vmatmul.mubr.msk.f32.vlgmr.msra.gmra.mrb[12].mxu1 %vm108_vm0, %v4328_v22 }
 0xad7   :  { %3165 = vmatprep.mubr.msk.f32.mxu1 %vm108_vm0, %v4332_v23 }
 0xba9   :  { %v3160_v16 = vpop.f32.mrb[12].mxu1 }
 0xbaa   :  { %v4404_v43 = vmul.f32 0.5, %v3160_v16  ;;  %v1831_v44 = vpop.f32.mrb[13].mxu1  ;;  %v2254_v16 = vld [vmem:[#allocation7 + $0xf38] sm:$0xff] }
 0xbab   :  { %v4406_v46 = vmul.f32 0.5, %v1831_v44  ;;  %v3731_v44 = vpack.c.bf16 %v2249_v41, %v2247_v39  ;;  %v2281_v39 = vld [vmem:[#allocation7 + $0x1010] sm:$0xff]  ;;  %v2284_v41 = vld [vmem:[#allocation7 + $0x1028] sm:$0xff] }
 0xbad   :  { %2420 = vmatprep.mubr.f32.mxu0 %v4406_v46  ;;  %v3617_v47 = vpack.c.bf16 %v4404_v43, %v4406_v46 }
 0xbae   :  { %2421 = vmatmul.mubr.f32.vlgmr.msra.gmra.mrb[20].mxu0 %v4394_v31 }
 0xbaf   :  { %3618 = vmatprep.subr.bf16.mxu1 %v3617_v47  ;;  %2426 = vmatprep.mubr.f32.mxu0 %v4404_v43 }
 0xbb0   :  { %3620 = vmatpush3.bf16.msra.mxu1 %v3617_v47  ;;  %3700 = vmatpush1.bf16.msra.mxu0 %v3699_v45  ;;  %v3733_v47 = vpack.c.bf16 %v2254_v16, %v2252_v42  ;;  %v2257_v45 = vld [vmem:[#allocation7 + $0xf50] sm:$0xff]  ;;  %v2286_v42 = vld [vmem:[#allocation7 + $0x1038] sm:$0xff] }
 0xbb1   :  { %3702 = vmatprep.subr.bf16.mxu0 %v3701_v53  ;;  %v2260_v53 = vld [vmem:[#allocation7 + $0xf68] sm:$0xff]  ;;  %v3739_v54 = vpack.c.bf16 %v2257_v45, %v2255_v52  ;;  %v2289_v52 = vld [vmem:[#allocation7 + $0x1050] sm:$0xff] }
 0xbb2   :  { %2427 = vmatmul.mubr.f32.gmra.mrb[22].mxu0 %v4396_v37  ;;  %v2292_v45 = vld [vmem:[#allocation7 + $0x1068] sm:$0xff] }
 0xbb3   :  { %3166 = vmatmul.mubr.msk.f32.vlgmr.msra.gmra.mrb[14].mxu1 %vm108_vm0, %v4328_v22  ;;  %v3705_v22 = vpack.c.bf16 %v2226_v56, %v2224_v55  ;;  %v3741_v55 = vpack.c.bf16 %v2262_v20, %v2260_v53  ;;  %v2259_v56 = vld [vmem:[#allocation7 + $0xf60] sm:$0xff]  ;;  %v2294_v53 = vld [vmem:[#allocation7 + $0x1078] sm:$0xff] }
 0xbb4   :  { %3172 = vmatprep.mubr.msk.f32.mxu1 %vm108_vm0, %v4332_v23  ;;  %v2225_v23 = vld [vmem:[#allocation7 + $0xe50] sm:$0xff]  ;;  %3704 = vmatpush1.bf16.msra.mxu0 %v3703_v57 }
 0xbb5   :  { %v3707_v63 = vpack.c.bf16 %v2225_v23, %v2223_v59  ;;  %3706 = vmatprep.subr.bf16.mxu0 %v3705_v22  ;;  %v2261_v57 = vld [vmem:[#allocation7 + $0xf70] sm:$0xff]  ;;  %v2264_v22 = vld [vmem:[#allocation7 + $0xf88] sm:$0xff]  ;;  %v2266_v59 = vld [vmem:[#allocation7 + $0xf98] sm:$0xff] }
 0xbb6   :  { %v3743_v23 = vpack.c.bf16 %v2261_v57, %v2259_v56  ;;  %v3745_v61 = vpack.c.bf16 %v2266_v59, %v2264_v22  ;;  %v2293_v56 = vld [vmem:[#allocation7 + $0x1070] sm:$0xff]  ;;  %v2296_v57 = vld [vmem:[#allocation7 + $0x1088] sm:$0xff]  ;;  %v2298_v22 = vld [vmem:[#allocation7 + $0x1098] sm:$0xff] }
 0xbb8   :  { %3708 = vmatpush1.bf16.msra.mxu0 %v3707_v63  ;;  %v2265_v63 = vld [vmem:[#allocation7 + $0xf90] sm:$0xff] }
 0xbb9   :  { %3710 = vmatprep.subr.bf16.mxu0 %v3709_v5  ;;  %v2268_v5 = vld [vmem:[#allocation7 + $0xfa8] sm:$0xff]  ;;  %v3747_v8 = vpack.c.bf16 %v2265_v63, %v2263_v62  ;;  %v2297_v62 = vld [vmem:[#allocation7 + $0x1090] sm:$0xff] }
 0xbba   :  { %v3749_v9 = vpack.c.bf16 %v2270_v7, %v2268_v5  ;;  %v2300_v63 = vld [vmem:[#allocation7 + $0x10a8] sm:$0xff]  ;;  %v2302_v5 = vld [vmem:[#allocation7 + $0x10b8] sm:$0xff] }
 0xbbc   :  { %3712 = vmatpush1.bf16.msra.mxu0 %v3711_v36  ;;  %v2269_v36 = vld [vmem:[#allocation7 + $0xfb0] sm:$0xff] }
 0xbbd   :  { %3714 = vmatprep.subr.bf16.mxu0 %v3713_v12  ;;  %v2272_v12 = vld [vmem:[#allocation7 + $0xfc8] sm:$0xff]  ;;  %v3751_v15 = vpack.c.bf16 %v2269_v36, %v2267_v10  ;;  %v2301_v10 = vld [vmem:[#allocation7 + $0x10b0] sm:$0xff] }
 0xbbe   :  { %v3753_v17 = vpack.c.bf16 %v2274_v14, %v2272_v12  ;;  %v2304_v36 = vld [vmem:[#allocation7 + $0x10c8] sm:$0xff]  ;;  %v2306_v12 = vld [vmem:[#allocation7 + $0x10d8] sm:$0xff] }
 0xbc0   :  { %3716 = vmatpush1.bf16.msra.mxu0 %v3715_v19  ;;  %v2273_v19 = vld [vmem:[#allocation7 + $0xfd0] sm:$0xff] }
 0xbc1   :  { %3718 = vmatprep.subr.bf16.mxu0 %v3717_v21  ;;  %v3755_v21 = vpack.c.bf16 %v2273_v19, %v2271_v18  ;;  %v2305_v18 = vld [vmem:[#allocation7 + $0x10d0] sm:$0xff]  ;;  %v2308_v19 = vld [vmem:[#allocation7 + $0x10e8] sm:$0xff] }
 0xbc4   :  { %3720 = vmatpush1.bf16.msra.mxu0 %v3719_v27 }
 0xbc5   :  { %3722 = vmatprep.subr.bf16.mxu0 %v3721_v28  ;;  %v4426_v28 = vld [vmem:[#allocation2 + $0x8] sm:$0xff] }
 0xbc8   :  { %3724 = vmatpush1.bf16.msra.mxu0 %v3723_v11 }
 0xbc9   :  { %3726 = vmatprep.subr.bf16.mxu0 %v3725_v4 }
 0xbcc   :  { %3728 = vmatpush1.bf16.msra.mxu0 %v3727_v33  ;;  %v2279_v33 = vld [vmem:[#allocation7 + $0x1000] sm:$0xff] }
 0xbcd   :  { %3730 = vmatprep.subr.bf16.mxu0 %v3729_v2  ;;  %v3763_v16 = vpack.c.bf16 %v2281_v39, %v2279_v33  ;;  %v2315_v33 = vld [vmem:[#allocation7 + $0x1120] sm:$0xff]  ;;  %v2320_v39 = vld [vmem:[#allocation7 + $0x1148] sm:$0xff] }
 0xbd0   :  { %3732 = vmatpush1.bf16.msra.mxu0 %v3731_v44  ;;  %v3765_v44 = vpack.c.bf16 %v2286_v42, %v2284_v41  ;;  %v2322_v41 = vld [vmem:[#allocation7 + $0x1158] sm:$0xff] }
 0xbd1   :  { %3734 = vmatprep.subr.bf16.mxu0 %v3733_v47  ;;  %v2283_v47 = vld [vmem:[#allocation7 + $0x1020] sm:$0xff] }
 0xbd2   :  { %v3767_v51 = vpack.c.bf16 %v2285_v48, %v2283_v47  ;;  %v2321_v47 = vld [vmem:[#allocation7 + $0x1150] sm:$0xff]  ;;  %v2324_v48 = vld [vmem:[#allocation7 + $0x1168] sm:$0xff] }
 0xbd4   :  { %3736 = vmatpush1.bf16.msra.mxu0 %v3735_v40  ;;  %v3769_v40 = vpack.c.bf16 %v2290_v50, %v2288_v49  ;;  %v2326_v49 = vld [vmem:[#allocation7 + $0x1178] sm:$0xff] }
 0xbd5   :  { %3738 = vmatprep.subr.bf16.mxu0 %v3737_v38  ;;  %v2287_v38 = vld [vmem:[#allocation7 + $0x1040] sm:$0xff] }
 0xbd6   :  { %v3771_v20 = vpack.c.bf16 %v2289_v52, %v2287_v38  ;;  %v2325_v38 = vld [vmem:[#allocation7 + $0x1170] sm:$0xff]  ;;  %v2328_v52 = vld [vmem:[#allocation7 + $0x1188] sm:$0xff] }
 0xbd8   :  { %3740 = vmatpush1.bf16.msra.mxu0 %v3739_v54  ;;  %v3773_v54 = vpack.c.bf16 %v2294_v53, %v2292_v45  ;;  %v2330_v45 = vld [vmem:[#allocation7 + $0x1198] sm:$0xff] }
 0xbd9   :  { %3742 = vmatprep.subr.bf16.mxu0 %v3741_v55  ;;  %v2291_v55 = vld [vmem:[#allocation7 + $0x1060] sm:$0xff] }
 0xbda   :  { %v3775_v59 = vpack.c.bf16 %v2293_v56, %v2291_v55  ;;  %v2329_v55 = vld [vmem:[#allocation7 + $0x1190] sm:$0xff]  ;;  %v2332_v56 = vld [vmem:[#allocation7 + $0x11a8] sm:$0xff] }
 0xbdc   :  { %3744 = vmatpush1.bf16.msra.mxu0 %v3743_v23  ;;  %v3777_v23 = vpack.c.bf16 %v2298_v22, %v2296_v57  ;;  %v2334_v57 = vld [vmem:[#allocation7 + $0x11b8] sm:$0xff] }
 0xbdd   :  { %3746 = vmatprep.subr.bf16.mxu0 %v3745_v61  ;;  %v2295_v61 = vld [vmem:[#allocation7 + $0x1080] sm:$0xff] }
 0xbde   :  { %v3779_v7 = vpack.c.bf16 %v2297_v62, %v2295_v61  ;;  %v2333_v61 = vld [vmem:[#allocation7 + $0x11b0] sm:$0xff]  ;;  %v2336_v62 = vld [vmem:[#allocation7 + $0x11c8] sm:$0xff] }
 0xbe0   :  { %3748 = vmatpush1.bf16.msra.mxu0 %v3747_v8  ;;  %v3781_v8 = vpack.c.bf16 %v2302_v5, %v2300_v63  ;;  %v2338_v63 = vld [vmem:[#allocation7 + $0x11d8] sm:$0xff] }
 0xbe1   :  { %3750 = vmatprep.subr.bf16.mxu0 %v3749_v9  ;;  %v2299_v9 = vld [vmem:[#allocation7 + $0x10a0] sm:$0xff] }
 0xbe2   :  { %v3783_v14 = vpack.c.bf16 %v2301_v10, %v2299_v9  ;;  %v2337_v9 = vld [vmem:[#allocation7 + $0x11d0] sm:$0xff] }
 0xbe4   :  { %3752 = vmatpush1.bf16.msra.mxu0 %v3751_v15  ;;  %v3785_v15 = vpack.c.bf16 %v2306_v12, %v2304_v36 }
 0xbe5   :  { %3754 = vmatprep.subr.bf16.mxu0 %v3753_v17  ;;  %v2303_v17 = vld [vmem:[#allocation7 + $0x10c0] sm:$0xff] }
 0xbe8   :  { %3756 = vmatpush1.bf16.msra.mxu0 %v3755_v21  ;;  %v2310_v21 = vld [vmem:[#allocation7 + $0x10f8] sm:$0xff] }
 0xc86   :  { %v3167_v34 = vpop.f32.mrb[14].mxu1 }
 0xc87   :  { %v4419_v24 = vsub.f32 %v3167_v34, %v4396_v37  ;;  %v1908_v25 = vpop.f32.mrb[15].mxu1  ;;  %v2276_v37 = vld [vmem:[#allocation7 + $0xfe8] sm:$0xff]  ;;  %v3787_v34 = vpack.c.bf16 %v2305_v18, %v2303_v17 }
 0xc88   :  { %v4422_v26 = vsub.f32 %v1908_v25, %v4394_v31  ;;  %v3757_v30 = vpack.c.bf16 %v2278_v0, %v2276_v37  ;;  %v2275_v31 = vld [vmem:[#allocation7 + $0xfe0] sm:$0xff]  ;;  %v3789_v25 = vpack.c.bf16 %v2310_v21, %v2308_v19  ;;  %v2309_v37 = vld [vmem:[#allocation7 + $0x10f0] sm:$0xff]  ;;  %v2312_v0 = vld [vmem:[#allocation7 + $0x1108] sm:$0xff] }
 0xc89   :  { %v3759_v11 = vpack.c.bf16 %v2277_v6, %v2275_v31  ;;  %v2340_v18 = vld [vmem:[#allocation7 + $0x11e8] sm:$0xff]  ;;  %v2342_v19 = vld [vmem:[#allocation7 + $0x11f8] sm:$0xff] }
 0xc8a   :  { %v3621_v27 = vpack.c.bf16 %v4419_v24, %v4422_v26  ;;  %3758 = vmatprep.subr.bf16.mxu0 %v3757_v30  ;;  %v2314_v30 = vld [vmem:[#allocation7 + $0x1118] sm:$0xff]  ;;  %v3821_v21 = vpack.c.bf16 %v2342_v19, %v2340_v18  ;;  %v2701_v18 = vld [vmem:[#allocation10 + $0xe8] sm:$0xff] }
 0xc8b   :  { %3760 = vmatpush1.bf16.msra.mxu0 %v3759_v11  ;;  %v3793_v6 = vpack.c.bf16 %v2314_v30, %v2312_v0  ;;  %v2311_v11 = vld [vmem:[#allocation7 + $0x1100] sm:$0xff] }
 0xc8c   :  { %3622 = vmatprep.subr.bf16.mxu1 %v3621_v27  ;;  %v2344_v30 = vld [vmem:[#allocation8 + $0x4] sm:$0x3] }
 0xc8d   :  { %3624 = vmatpush3.bf16.msra.mxu1 %v3621_v27  ;;  %v2307_v27 = vld [vmem:[#allocation7 + $0x10e0] sm:$0xff] }
 0xc8e   :  { %v3791_v31 = vpack.c.bf16 %v2309_v37, %v2307_v27 }
 0xc90   :  { %3173 = vmatmul.mubr.msk.f32.vlgmr.msra.gmra.mrb[16].mxu1 %vm108_vm0, %v4426_v28 }
 0xc91   :  { %3179 = vmatprep.mubr.msk.f32.mxu1 %vm108_vm0, %v4430_v29 }
 0xd63   :  { %v3174_v4 = vpop.f32.mrb[16].mxu1 }
 0xd64   :  { %v4435_v35 = vsub.f32 %v3174_v4, %v4404_v43  ;;  %v1985_v1 = vpop.f32.mrb[17].mxu1  ;;  %v2280_v43 = vld [vmem:[#allocation7 + $0x1008] sm:$0xff]  ;;  %v2313_v4 = vld [vmem:[#allocation7 + $0x1110] sm:$0xff] }
 0xd65   :  { %v4438_v32 = vsub.f32 %v1985_v1, %v4406_v46  ;;  %v2282_v46 = vld [vmem:[#allocation7 + $0x1018] sm:$0xff]  ;;  %v2316_v1 = vld [vmem:[#allocation7 + $0x1128] sm:$0xff] }
 0xd66   :  { %v3761_v2 = vpack.c.bf16 %v2282_v46, %v2280_v43  ;;  %v3795_v43 = vpack.c.bf16 %v2313_v4, %v2311_v11 }
 0xd67   :  { %2497 = vmatprep.mubr.f32.mxu0 %v4438_v32  ;;  %v3625_v13 = vpack.c.bf16 %v4435_v35, %v4438_v32 }
 0xd68   :  { %2498 = vmatmul.mubr.f32.vlgmr.msra.gmra.mrb[20].mxu0 %v4422_v26  ;;  %3762 = vmatprep.subr.bf16.mxu0 %v3761_v2  ;;  %v2317_v2 = vld [vmem:[#allocation7 + $0x1130] sm:$0xff] }
 0xd69   :  { %3626 = vmatprep.subr.bf16.mxu1 %v3625_v13  ;;  %2503 = vmatprep.mubr.f32.mxu0 %v4435_v35  ;;  %v3799_v42 = vpack.c.bf16 %v2317_v2, %v2315_v33 }
 0xd6a   :  { %3628 = vmatpush3.bf16.msra.mxu1 %v3625_v13  ;;  %3764 = vmatpush1.bf16.msra.mxu0 %v3763_v16  ;;  %v2318_v13 = vld [vmem:[#allocation7 + $0x1138] sm:$0xff]  ;;  %v3801_v16 = vpack.c.bf16 %v2322_v41, %v2320_v39  ;;  %v2688_v41 = vld [vmem:[#allocation10 + $0x80] sm:$0xff] }
 0xd6b   :  { %3766 = vmatprep.subr.bf16.mxu0 %v3765_v44  ;;  %v3797_v46 = vpack.c.bf16 %v2318_v13, %v2316_v1  ;;  %v2319_v44 = vld [vmem:[#allocation7 + $0x1140] sm:$0xff] }
 0xd6c   :  { %2504 = vmatmul.mubr.f32.gmra.mrb[22].mxu0 %v4419_v24  ;;  %v3803_v50 = vpack.c.bf16 %v2321_v47, %v2319_v44  ;;  %v2673_v47 = vld [vmem:[#allocation10 + $0x8] sm:$0xff] }
 0xd6d   :  { %3180 = vmatmul.mubr.msk.f32.vlgmr.msra.gmra.mrb[18].mxu1 %vm108_vm0, %v4426_v28 }
 0xd6e   :  { %3186 = vmatprep.mubr.msk.f32.mxu1 %vm108_vm0, %v4430_v29  ;;  %3768 = vmatpush1.bf16.msra.mxu0 %v3767_v51  ;;  %v3805_v51 = vpack.c.bf16 %v2326_v49, %v2324_v48  ;;  %v2690_v48 = vld [vmem:[#allocation10 + $0x90] sm:$0xff]  ;;  %v2691_v49 = vld [vmem:[#allocation10 + $0x98] sm:$0xff] }
 0xd6f   :  { %3770 = vmatprep.subr.bf16.mxu0 %v3769_v40  ;;  %v2323_v40 = vld [vmem:[#allocation7 + $0x1160] sm:$0xff] }
 0xd70   :  { %v3807_v53 = vpack.c.bf16 %v2325_v38, %v2323_v40  ;;  %v2674_v40 = vld [vmem:[#allocation10 + $0x10] sm:$0xff]  ;;  %v2675_v38 = vld [vmem:[#allocation10 + $0x18] sm:$0xff] }
 0xd72   :  { %3772 = vmatpush1.bf16.msra.mxu0 %v3771_v20  ;;  %v3809_v20 = vpack.c.bf16 %v2330_v45, %v2328_v52  ;;  %v2692_v52 = vld [vmem:[#allocation10 + $0xa0] sm:$0xff]  ;;  %v2693_v45 = vld [vmem:[#allocation10 + $0xa8] sm:$0xff] }
 0xd73   :  { %3774 = vmatprep.subr.bf16.mxu0 %v3773_v54  ;;  %v2327_v54 = vld [vmem:[#allocation7 + $0x1180] sm:$0xff] }
 0xd74   :  { %v3811_v22 = vpack.c.bf16 %v2329_v55, %v2327_v54  ;;  %v2676_v54 = vld [vmem:[#allocation10 + $0x20] sm:$0xff]  ;;  %v2677_v55 = vld [vmem:[#allocation10 + $0x28] sm:$0xff] }
 0xd76   :  { %3776 = vmatpush1.bf16.msra.mxu0 %v3775_v59  ;;  %v3813_v59 = vpack.c.bf16 %v2334_v57, %v2332_v56  ;;  %v2694_v56 = vld [vmem:[#allocation10 + $0xb0] sm:$0xff]  ;;  %v2695_v57 = vld [vmem:[#allocation10 + $0xb8] sm:$0xff] }
 0xd77   :  { %3778 = vmatprep.subr.bf16.mxu0 %v3777_v23  ;;  %v2331_v23 = vld [vmem:[#allocation7 + $0x11a0] sm:$0xff] }
 0xd78   :  { %v3815_v5 = vpack.c.bf16 %v2333_v61, %v2331_v23  ;;  %v3841_v23 = vpack.c.bf16 %v2695_v57, %v2694_v56  ;;  %v2678_v61 = vld [vmem:[#allocation10 + $0x30] sm:$0xff]  ;;  %v2731_v56 = vld [vmem:[#allocation10 + $0x1d8] sm:$0xff] }
 0xd7a   :  { %3780 = vmatpush1.bf16.msra.mxu0 %v3779_v7  ;;  %v3817_v7 = vpack.c.bf16 %v2338_v63, %v2336_v62  ;;  %v2696_v62 = vld [vmem:[#allocation10 + $0xc0] sm:$0xff]  ;;  %v2697_v63 = vld [vmem:[#allocation10 + $0xc8] sm:$0xff] }
 0xd7b   :  { %3782 = vmatprep.subr.bf16.mxu0 %v3781_v8  ;;  %v2335_v8 = vld [vmem:[#allocation7 + $0x11c0] sm:$0xff] }
 0xd7c   :  { %v3819_v10 = vpack.c.bf16 %v2337_v9, %v2335_v8  ;;  %v2680_v8 = vld [vmem:[#allocation10 + $0x40] sm:$0xff]  ;;  %v2681_v9 = vld [vmem:[#allocation10 + $0x48] sm:$0xff] }
 0xd7e   :  { %3784 = vmatpush1.bf16.msra.mxu0 %v3783_v14 }
 0xd7f   :  { %3786 = vmatprep.subr.bf16.mxu0 %v3785_v15 }
 0xd82   :  { %3788 = vmatpush1.bf16.msra.mxu0 %v3787_v34  ;;  %v2339_v34 = vld [vmem:[#allocation7 + $0x11e0] sm:$0xff] }
 0xd83   :  { %3790 = vmatprep.subr.bf16.mxu0 %v3789_v25  ;;  %v2341_v25 = vld [vmem:[#allocation7 + $0x11f0] sm:$0xff] }
 0xd84   :  { %v3823_v27 = vpack.c.bf16 %v2341_v25, %v2339_v34  ;;  %v2684_v34 = vld [vmem:[#allocation10 + $0x60] sm:$0xff]  ;;  %v2685_v25 = vld [vmem:[#allocation10 + $0x68] sm:$0xff] }
 0xd86   :  { %3792 = vmatpush1.bf16.msra.mxu0 %v3791_v31  ;;  %v2349_v31 = vrot.slane %v2344_v30, %v4322_v58  ;;  %v2672_v58 = vld [vmem:[#allocation10] sm:$0xff] }
 0xd87   :  { %3794 = vmatprep.subr.bf16.mxu0 %v3793_v6  ;;  %v2353_v6 = vrot.slane %v2344_v30, %v4324_v60  ;;  %v2720_v30 = vld [vmem:[#allocation10 + $0x180] sm:$0xff] }
 0xd8a   :  { %3796 = vmatpush1.bf16.msra.mxu0 %v3795_v43 }
 0xd8b   :  { %3798 = vmatprep.subr.bf16.mxu0 %v3797_v46 }
 0xd8e   :  { %3800 = vmatpush1.bf16.msra.mxu0 %v3799_v42  ;;  %v2689_v42 = vld [vmem:[#allocation10 + $0x88] sm:$0xff] }
 0xd8f   :  { %3802 = vmatprep.subr.bf16.mxu0 %v3801_v16  ;;  %v3829_v44 = vpack.c.bf16 %v2689_v42, %v2688_v41  ;;  %v2725_v41 = vld [vmem:[#allocation10 + $0x1a8] sm:$0xff]  ;;  %v3948_v42 = vld [vmem:[#allocation5 + $0x8] sm:$0xff] }
 0xd92   :  { %3804 = vmatpush1.bf16.msra.mxu0 %v3803_v50  ;;  %v3831_v50 = vpack.c.bf16 %v2673_v47, %v2672_v58  ;;  %v2708_v47 = vld [vmem:[#allocation10 + $0x120] sm:$0xff] }
 0xd93   :  { %3806 = vmatprep.subr.bf16.mxu0 %v3805_v51  ;;  %v3833_v51 = vpack.c.bf16 %v2691_v49, %v2690_v48  ;;  %v2726_v48 = vld [vmem:[#allocation10 + $0x1b0] sm:$0xff]  ;;  %v2727_v49 = vld [vmem:[#allocation10 + $0x1b8] sm:$0xff] }
 0xd96   :  { %3808 = vmatpush1.bf16.msra.mxu0 %v3807_v53  ;;  %v3835_v53 = vpack.c.bf16 %v2675_v38, %v2674_v40  ;;  %v2710_v40 = vld [vmem:[#allocation10 + $0x130] sm:$0xff]  ;;  %v2711_v38 = vld [vmem:[#allocation10 + $0x138] sm:$0xff] }
 0xd97   :  { %3810 = vmatprep.subr.bf16.mxu0 %v3809_v20  ;;  %v3837_v20 = vpack.c.bf16 %v2693_v45, %v2692_v52  ;;  %v2728_v52 = vld [vmem:[#allocation10 + $0x1c0] sm:$0xff]  ;;  %v3875_v45 = vpack.c.bf16 %v2711_v38, %v2710_v40 }
 0xd9a   :  { %3812 = vmatpush1.bf16.msra.mxu0 %v3811_v22  ;;  %v3839_v22 = vpack.c.bf16 %v2677_v55, %v2676_v54  ;;  %v2713_v54 = vld [vmem:[#allocation10 + $0x148] sm:$0xff]  ;;  %v2730_v55 = vld [vmem:[#allocation10 + $0x1d0] sm:$0xff] }
 0xd9b   :  { %3814 = vmatprep.subr.bf16.mxu0 %v3813_v59  ;;  %v3947_v59 = vld [vmem:[#allocation5] sm:$0xff] }
 0xd9e   :  { %3816 = vmatpush1.bf16.msra.mxu0 %v3815_v5 }
 0xd9f   :  { %3818 = vmatprep.subr.bf16.mxu0 %v3817_v7  ;;  %v3845_v7 = vpack.c.bf16 %v2697_v63, %v2696_v62  ;;  %v2716_v63 = vld [vmem:[#allocation10 + $0x160] sm:$0xff] }
 0xda2   :  { %3820 = vmatpush1.bf16.msra.mxu0 %v3819_v10  ;;  %v2698_v10 = vld [vmem:[#allocation10 + $0xd0] sm:$0xff] }
 0xda3   :  { %3822 = vmatprep.subr.bf16.mxu0 %v3821_v21 }
 0xda6   :  { %3824 = vmatpush1.bf16.msra.mxu0 %v3823_v27  ;;  %v2702_v27 = vld [vmem:[#allocation10 + $0xf0] sm:$0xff] }
 0xe40   :  { %v3181_v36 = vpop.f32.mrb[18].mxu1 }
 0xe41   :  { %v2072_v12 = vsub.f32 %v3181_v36, %v4419_v24  ;;  %v2062_v14 = vpop.f32.mrb[19].mxu1  ;;  %v2699_v36 = vld [vmem:[#allocation10 + $0xd8] sm:$0xff] }
 0xe42   :  { %v2071_v15 = vsub.f32 %v2062_v14, %v4422_v26  ;;  %v2682_v14 = vld [vmem:[#allocation10 + $0x50] sm:$0xff] }
 0xe44   :  { %v3629_v17 = vpack.c.bf16 %v2072_v12, %v2071_v15 }
 0xe46   :  { %3630 = vmatprep.subr.bf16.mxu1 %v3629_v17 }
 0xe47   :  { %3632 = vmatpush3.bf16.msra.mxu1 %v3629_v17  ;;  %v2700_v17 = vld [vmem:[#allocation10 + $0xe0] sm:$0xff] }
 0xe48   :  { %3826 = vmatprep.subr.bf16.mxu1 %v4265_v3  ;;  %v4125_v3 = vmov 0.0   ;;  %v3853_v21 = vpack.c.bf16 %v2701_v18, %v2700_v17 }
 0xe4a   :  { %3187 = vmatmul.mubr.msk.f32.vlgmr.msra.gmra.mrb[20].mxu1 %vm108_vm0, %v4426_v28 }
 0xe4b   :  { %2655 = vmatprep.mubr.f32.mxu1 %v4125_v3 }
 0xf1d   :  { %v3188_v24 = vpop.f32.mrb[20].mxu1 }
 0xf1e   :  { %v2139_v37 = vpop.f32.mrb[21].mxu1  ;;  %v2149_v0 = vsub.f32 %v3188_v24, %v4435_v35  ;;  %v2703_v24 = vld [vmem:[#allocation10 + $0xf8] sm:$0xff] }
 0xf1f   :  { %v2148_v26 = vsub.f32 %v2139_v37, %v4438_v32  ;;  %v3855_v37 = vpack.c.bf16 %v2685_v25, %v2684_v34 }
 0xf21   :  { %2574 = vmatprep.mubr.f32.mxu0 %v2148_v26  ;;  %v3857_v26 = vpack.c.bf16 %v2703_v24, %v2702_v27 }
 0xf22   :  { %2575 = vmatmul.mubr.f32.vlgmr.msra.gmra.mrb[20].mxu0 %v2071_v15  ;;  %v2683_v15 = vld [vmem:[#allocation10 + $0x58] sm:$0xff] }
 0xf23   :  { %2580 = vmatprep.mubr.f32.mxu0 %v2149_v0  ;;  %v3851_v19 = vpack.c.bf16 %v2683_v15, %v2682_v14  ;;  %v2686_v0 = vld [vmem:[#allocation10 + $0x70] sm:$0xff] }
 0xf26   :  { %2581 = vmatmul.mubr.f32.gmra.mrb[22].mxu0 %v2072_v12  ;;  %v3849_v12 = vpack.c.bf16 %v2699_v36, %v2698_v10  ;;  %v2718_v36 = vld [vmem:[#allocation10 + $0x170] sm:$0xff] }
 0xff5   :  { %v2576_v11 = vpop.f32.mrb[20].mxu0 }
 0xff6   :  { %v3905_v4 = vadd.f32 %v2576_v11, %v2349_v31  ;;  %v2578_v1 = vpop.f32.mrb[21].mxu0 }
 0xff7   :  { %v3906_v13 = vadd.f32 %v2578_v1, %v2353_v6  ;;  %v2705_v1 = vld [vmem:[#allocation10 + $0x108] sm:$0xff] }
 0xff8   :  { %v2587_v43 = vmax.f32 %v3905_v4, 0.0  ;;  %v2704_v4 = vld [vmem:[#allocation10 + $0x100] sm:$0xff] }
 0xff9   :  { %v2582_v46 = vpop.f32.mrb[22].mxu0 }
 0xffa   :  { %v4459_v32 = vadd.f32 %v3906_v13, %v2587_v43  ;;  %v3907_v35 = vadd.f32 %v2582_v46, %v2349_v31  ;;  %v2584_v33 = vpop.f32.mrb[23].mxu0  ;;  %v2721_v31 = vld [vmem:[#allocation10 + $0x188] sm:$0xff]  ;;  %v2722_v13 = vld [vmem:[#allocation10 + $0x190] sm:$0xff]  ;;  %v2723_v43 = vld [vmem:[#allocation10 + $0x198] sm:$0xff]  ;;  %v3863_v46 = vpack.c.bf16 %v2705_v1, %v2704_v4 }
 0xffb   :  { %v3908_v2 = vadd.f32 %v2584_v33, %v2353_v6  ;;  %v3861_v11 = vpack.c.bf16 %v2721_v31, %v2720_v30  ;;  %v2706_v33 = vld [vmem:[#allocation10 + $0x110] sm:$0xff]  ;;  %v2947_v30 = vld [vmem:[#allocation11] ss:$0 sm:$0xff] }
 0xffc   :  { %v2588_v39 = vmax.f32 %v3907_v35, 0.0  ;;  %v3865_v35 = vpack.c.bf16 %v2723_v43, %v2722_v13 }
 0xffe   :  { %v4461_v16 = vadd.f32 %v3908_v2, %v2588_v39  ;;  %v2707_v2 = vld [vmem:[#allocation10 + $0x118] sm:$0xff]  ;;  %v2724_v39 = vld [vmem:[#allocation10 + $0x1a0] sm:$0xff] }
 0xfff   :  { %v3869_v58 = vpack.c.bf16 %v2725_v41, %v2724_v39 }
0x1000   :  { %v3827_v60 = vpack.c.bf16 %v4461_v16, %v4459_v32 }
0x1002   :  { %3828 = vmatpush1.bf16.msra.mxu1 %v3827_v60  ;;  %v2709_v60 = vld [vmem:[#allocation10 + $0x128] sm:$0xff] }
0x1003   :  { %3830 = vmatprep.subr.bf16.mxu1 %v3829_v44  ;;  %v3867_v44 = vpack.c.bf16 %v2707_v2, %v2706_v33 }
0x1005   :  { %2945 = vmatmul.mubr.msk.f32.vlgmr.msra.gmra.mrb[22].mxu1 %vm108_vm0, %v4430_v29  ;;  %v2679_v29 = vld [vmem:[#allocation10 + $0x38] sm:$0xff] }
0x1006   :  { %3832 = vmatpush3.bf16.msra.mxu1 %v3831_v50  ;;  %2661 = vmatprep.mubr.f32.mxu1 %v4125_v3  ;;  %v3843_v5 = vpack.c.bf16 %v2679_v29, %v2678_v61  ;;  %v2687_v3 = vld [vmem:[#allocation10 + $0x78] sm:$0xff]  ;;  %v3871_v50 = vpack.c.bf16 %v2709_v60, %v2708_v47  ;;  %v2733_v61 = vld [vmem:[#allocation10 + $0x1e8] sm:$0xff] }
0x1007   :  { %3834 = vmatprep.subr.bf16.mxu1 %v3833_v51  ;;  %v3859_v6 = vpack.c.bf16 %v2687_v3, %v2686_v0  ;;  %v3873_v51 = vpack.c.bf16 %v2727_v49, %v2726_v48 }
0x1009   :  { %2946 = vmatmul.mubr.msk.f32.gmra.mrb[24].mxu1 %vm108_vm0, %v4426_v28  ;;  %v3847_v28 = vpack.c.bf16 %v2681_v9, %v2680_v8  ;;  %v2734_v8 = vld [vmem:[#allocation10 + $0x1f0] sm:$0xff]  ;;  %v2735_v9 = vld [vmem:[#allocation10 + $0x1f8] sm:$0xff] }
0x100a   :  { %3836 = vmatpush3.bf16.msra.mxu1 %v3835_v53  ;;  %2807 = vmatprep.mubr.f32.mxu1 %v3947_v59  ;;  %v2715_v59 = vld [vmem:[#allocation10 + $0x158] sm:$0xff]  ;;  %v3889_v10 = vpack.c.bf16 %v2735_v9, %v2734_v8 }
0x100b   :  { %3838 = vmatprep.subr.bf16.mxu1 %v3837_v20  ;;  %v2712_v20 = vld [vmem:[#allocation10 + $0x140] sm:$0xff] }
0x100c   :  { %v3879_v57 = vpack.c.bf16 %v2713_v54, %v2712_v20 }
0x100e   :  { %3840 = vmatpush3.bf16.msra.mxu1 %v3839_v22  ;;  %v2714_v22 = vld [vmem:[#allocation10 + $0x150] sm:$0xff] }
0x100f   :  { %3842 = vmatprep.subr.bf16.mxu1 %v3841_v23  ;;  %v2732_v23 = vld [vmem:[#allocation10 + $0x1e0] sm:$0xff]  ;;  %v3883_v29 = vpack.c.bf16 %v2715_v59, %v2714_v22 }
0x1010   :  { %v3885_v62 = vpack.c.bf16 %v2733_v61, %v2732_v23 }
0x1012   :  { %3844 = vmatpush3.bf16.msra.mxu1 %v3843_v5  ;;  %v2717_v5 = vld [vmem:[#allocation10 + $0x168] sm:$0xff] }
0x1013   :  { %3846 = vmatprep.subr.bf16.mxu1 %v3845_v7  ;;  %v3887_v7 = vpack.c.bf16 %v2717_v5, %v2716_v63 }
0x1016   :  { %3848 = vmatpush3.bf16.msra.mxu1 %v3847_v28  ;;  %v2719_v28 = vld [vmem:[#allocation10 + $0x178] sm:$0xff] }
0x1017   :  { %3850 = vmatprep.subr.bf16.mxu1 %v3849_v12  ;;  %v3891_v12 = vpack.c.bf16 %v2719_v28, %v2718_v36 }
0x101a   :  { %3852 = vmatpush3.bf16.msra.mxu1 %v3851_v19 }
0x101b   :  { %3854 = vmatprep.subr.bf16.mxu1 %v3853_v21 }
0x101e   :  { %3856 = vmatpush3.bf16.msra.mxu1 %v3855_v37 }
0x101f   :  { %3858 = vmatprep.subr.bf16.mxu1 %v3857_v26 }
0x1022   :  { %3860 = vmatpush3.bf16.msra.mxu1 %v3859_v6 }
0x1023   :  { %3862 = vmatprep.subr.bf16.mxu1 %v3861_v11 }
0x1025   :  { %2808 = vmatmul.mubr.f32.vlgmr.msra.gmra.mrb[26].mxu1 %v4459_v32  ;;  %v2729_v32 = vld [vmem:[#allocation10 + $0x1c8] sm:$0xff] }
0x1026   :  { %2812 = vmatprep.mubr.f32.mxu1 %v3948_v42  ;;  %3864 = vmatpush3.bf16.msra.mxu1 %v3863_v46  ;;  %v3877_v53 = vpack.c.bf16 %v2729_v32, %v2728_v52 }
0x1027   :  { %3866 = vmatprep.subr.bf16.mxu1 %v3865_v35 }
0x1029   :  { %2813 = vmatmul.mubr.f32.gmra.mrb[28].mxu1 %v4461_v16  ;;  %v3881_v16 = vpack.c.bf16 %v2731_v56, %v2730_v55 }
0x102a   :  { %3868 = vmatpush3.bf16.msra.mxu1 %v3867_v44 }
0x102b   :  { %3870 = vmatprep.subr.bf16.mxu1 %v3869_v58 }
0x102e   :  { %3872 = vmatpush3.bf16.msra.mxu1 %v3871_v50 }
0x102f   :  { %3874 = vmatprep.subr.bf16.mxu1 %v3873_v51 }
0x1032   :  { %3876 = vmatpush3.bf16.msra.mxu1 %v3875_v45 }
0x1033   :  { %3878 = vmatprep.subr.bf16.mxu1 %v3877_v53 }
0x1036   :  { %3880 = vmatpush3.bf16.msra.mxu1 %v3879_v57 }
0x1037   :  { %3882 = vmatprep.subr.bf16.mxu1 %v3881_v16 }
0x103a   :  { %3884 = vmatpush3.bf16.msra.mxu1 %v3883_v29 }
0x103b   :  { %3886 = vmatprep.subr.bf16.mxu1 %v3885_v62 }
0x103e   :  { %3888 = vmatpush3.bf16.msra.mxu1 %v3887_v7 }
0x103f   :  { %3890 = vmatprep.subr.bf16.mxu1 %v3889_v10 }
0x1042   :  { %3892 = vmatpush3.bf16.msra.mxu1 %v3891_v12 }
0x10d8   :  { %v2657_v14 = vpop.f32.mrb[22].mxu1 }
0x10d9   :  { %v2659_v15 = vpop.f32.mrb[23].mxu1  ;;  %v2668_v18 = vmul.f32 0.5, %v2657_v14 }
0x10da   :  { %v2669_v17 = vmul.f32 0.5, %v2659_v15 }
0x10dc   :  { %v2663_v19 = vpop.f32.mrb[24].mxu1  ;;  %2882 = vmatprep.mubr.f32.mxu1 %v2669_v17 }
0x10dd   :  { %v2665_v21 = vpop.f32.mrb[25].mxu1  ;;  %2883 = vmatmul.mubr.f32.vlgmr.msra.gmra.mrb[30].mxu1 %v2668_v18  ;;  %v2670_v25 = vmul.f32 0.5, %v2663_v19 }
0x10de   :  { %v2671_v34 = vmul.f32 0.5, %v2665_v21 }
0x10e0   :  { %2887 = vmatprep.mubr.f32.mxu1 %v2671_v34 }
0x10e1   :  { %2888 = vmatmul.mubr.f32.gmra.mrb[32].mxu1 %v2670_v25 }
0x10f8   :  { %v3040_v27 = vpop.f32.mrb[26].mxu1 }
0x10f9   :  { %v3041_v24 = vpop.f32.mrb[27].mxu1 }
0x10fa   :  { %v3042_v37 = vadd.f32 %v3041_v24, %v3040_v27 }
0x10fc   :  { %v3043_v26 = vpop.f32.mrb[28].mxu1  ;;  %v2810_v11 = vadd.f32 %v3042_v37, %v2947_v30 }
0x10fd   :  { %v3044_v0 = vpop.f32.mrb[29].mxu1 }
0x10fe   :  { %v3045_v3 = vadd.f32 %v3044_v0, %v3043_v26 }
0x1100   :  { %v2815_v46 = vadd.f32 %v3045_v3, %v2947_v30 }
0x11b0   :  { %v3078_v31 = vpop.f32.mrb[30].mxu1 }
0x11b1   :  { %v3079_v6 = vpop.f32.mrb[31].mxu1 }
0x11b2   :  { %v3080_v4 = vadd.f32 %v3079_v6, %v3078_v31 }
0x11b4   :  { %v2885_v1 = vadd.f32 %v3080_v4, %v2810_v11  ;;  %v3081_v13 = vpop.f32.mrb[32].mxu1 }
0x11b5   :  { %v3082_v43 = vpop.f32.mrb[33].mxu1 }
0x11b6   :  { %2893 = vst [vmem:[#allocation13] sm:$0xff] %v2885_v1  ;;  %v3083_v35 = vadd.f32 %v3082_v43, %v3081_v13 }
0x11b8   :  { %v2890_v33 = vadd.f32 %v3083_v35, %v2815_v46 }
0x11ba   :  { %2894 = vst [vmem:[#allocation13 + $0x8] sm:$0xff] %v2890_v33 }
0x11bb   :  { %4092 = shalt.err (!%p4089_p10)
}
0x11bc   :  { %s4093_s29 = scalar_lea.hbm %s4492_s6, 256 }
0x11bd   :  { %p4094_p11 = scmp.ne.s32.totalorder %s4492_s6, %s4093_s29  ;;  %p4097_p12 = scmp.lt.u32.totalorder %s4093_s29, %s4492_s6 }
0x11bf   :  { %p4099_p13 = pnand %p4097_p12, %p4094_p11 }
0x11c1   :  { %4102 = shalt.err (!%p4099_p13)
}
0x11c2   :  { %2906 = dma.vmem_to_hbm [thread:$0]  %s2901_s23, 256, %s4492_s6, [#allocation4], %s4115_s9, %s4115_s9, %s4116_s10  }
0x11c3   :  { %4111 = dma.done.wait [#allocation4], 256  }
0x11c4   :  { %4112 = vsyncadd [#allocation4], 4294967040 }
0x11c5   :  { %2910 = vsyncpa [#allocation3], 1 }
0x11c6   :  { %2911 = vsyncpa [#allocation6], 1 }
0x11c7   :  { %2912 = vsyncpa [#allocation9], 1 }
0x11c8   :  { %2913 = vsyncpa [#allocation12], 1 }
0x11c9   :  { %2914 = vsyncpa [#allocation4], 1 }

</bundles_post_ra>
